<compile_context>
chip_gen: v7x
topology: tpu7x:2x2x1
jax: 0.10.0
libtpu: 0.0.40
codegen_flags: <defaults>
</compile_context>

<pallas_src>
import functools
import math

import jax
import jax.numpy as jnp
import numpy as np
from jax.experimental import pallas as pl
from jax.experimental.pallas import tpu as pltpu


def _ceil_to(x, m):
    return ((x + m - 1) // m) * m


def _spherical_cheb_bn_pool_kernel(x_ref, lapT_ref, wbig_ref, scale_ref, shift_ref,
                                   o_ref, *, k_order):
    """One grid step = one block of Bblk (padded) batch elements.

    x_ref     : (POOL, Cin, Bblk, Vp)    pool groups leading, vertices on lanes
    lapT_ref  : (Vp, Vp)                 transposed dense (rescaled) Laplacian
    wbig_ref  : (Cout*Bblk, K*Cin*Bblk)  batch-block-diagonal fused Cheb weights
    scale_ref : (Cout*Bblk, 1)           fused BN scale  = gamma / sqrt(var+eps)
    shift_ref : (Cout*Bblk, 1)           fused BN shift  = scale*(bias-mean)+beta
    o_ref     : (Cout, Bblk, Vp)         output block (lane-dense store)
    """
    # --- pooling: elementwise max over the POOL leading slices (pure VPU) ---
    pooled = x_ref[0]
    for j in range(1, x_ref.shape[0]):
        pooled = jnp.maximum(pooled, x_ref[j])          # (Cin, Bblk, Vp)
    cin, bblk, vp = pooled.shape

    # --- Chebyshev recurrence; batch*channels stacked on the MXU M dim ---
    # row index = ci*Bblk + b (sublane-trivial reshape), lanes = Vp.
    lap_t = lapT_ref[...]
    t0 = pooled.reshape(cin * bblk, vp)
    t_list = [t0]
    if k_order > 1:
        t1 = jnp.dot(t0, lap_t, preferred_element_type=jnp.float32)
        t_list.append(t1)
        for _ in range(2, k_order):
            t2 = 2.0 * jnp.dot(t1, lap_t, preferred_element_type=jnp.float32) - t0
            t_list.append(t2)
            t0, t1 = t1, t2

    # --- single fused weight contraction + bias/BN + ReLU, single store ---
    slab = t_list[0] if k_order == 1 else jnp.concatenate(t_list, axis=0)
    acc = jnp.dot(wbig_ref[...], slab,
                  preferred_element_type=jnp.float32)   # (Cout*Bblk, Vp)
    y = jnp.maximum(acc * scale_ref[...] + shift_ref[...], 0.0)
    o_ref[...] = y.reshape(o_ref.shape)                 # (Cout, Bblk, Vp)


def spherical_cheb_bn_pool(x, lap, weight, bias, gamma, beta, run_mean, run_var,
                           *, pool=4, eps=1e-5, batch_block=None):
    """x: (B, V, Cin) -> (B, V // pool, Cout)   [batch x vertices x channels]."""
    B, V, Cin = x.shape
    K, _, Cout = weight.shape
    assert V % pool == 0
    Vp = V // pool
    assert lap.shape == (Vp, Vp)

    # --- batch block: fill the MXU M dim, pad B, keep >= 2 parallel steps ---
    if batch_block is None:
        batch_block = _ceil_to(max(8, 256 // max(Cin, 1)), 8)   # Cin*bblk ~ 256
    bblk = _ceil_to(min(batch_block, _ceil_to(B, 8)), 8)
    if B >= 16:
        # at least two "parallel" grid steps so both v7x TensorCores get work
        bblk = min(bblk, _ceil_to((B + 1) // 2, 8))
    b_pad = _ceil_to(B, bblk)       # pad B up; never shrink bblk to a divisor
    n_blocks = b_pad // bblk

    # --- wrapper-side layout plumbing (outside the kernel) ---
    x = x.astype(jnp.float32)
    if b_pad != B:
        x = jnp.pad(x, ((0, b_pad - B), (0, 0), (0, 0)))
    # (B, V, Cin) -> (B, Vp, pool, Cin) -> (pool, Cin, B, Vp)
    x_r = jnp.transpose(x.reshape(b_pad, Vp, pool, Cin), (2, 3, 0, 1))

    lap_t = jnp.transpose(lap).astype(jnp.float32)                   # (Vp, Vp)

    # batch-block-diagonal fused Chebyshev weight:
    #   W_big[co*bblk + b, (k*Cin + ci)*bblk + b'] = weight[k, ci, co] * [b == b']
    w_okc = jnp.transpose(weight, (2, 0, 1)).astype(jnp.float32)     # (Cout, K, Cin)
    eye_b = jnp.eye(bblk, dtype=jnp.float32)
    w_big = jnp.einsum("okc,bp->obkcp", w_okc, eye_b).reshape(
        Cout * bblk, K * Cin * bblk)

    # fold conv bias + BN affine into per-(channel, batch-row) scale / shift
    inv_std = 1.0 / jnp.sqrt(run_var.astype(jnp.float32) + eps)
    scale_c = gamma.astype(jnp.float32) * inv_std                    # (Cout,)
    shift_c = scale_c * (bias.astype(jnp.float32) - run_mean.astype(jnp.float32)) \
        + beta.astype(jnp.float32)
    scale_big = jnp.repeat(scale_c, bblk).reshape(Cout * bblk, 1)
    shift_big = jnp.repeat(shift_c, bblk).reshape(Cout * bblk, 1)

    # --- VMEM budget: computed from block sizes, capped below v7x's 64 MiB ---
    f32 = 4
    x_blk_b = pool * Cin * bblk * Vp * f32                 # x block (x2 buffers)
    o_blk_b = Cout * bblk * Vp * f32                       # output block (x2)
    inv_b = Vp * Vp * f32 + w_big.size * f32 + 2 * Cout * bblk * f32
    live_b = (2 * K + 4) * Cin * bblk * Vp * f32           # T_k live set + slab + acc
    vmem_needed = 2 * x_blk_b + 2 * o_blk_b + inv_b + live_b
    vmem_limit = int(min(48 * 2**20, max(32 * 2**20, 2 * vmem_needed)))

    x_spec = pl.BlockSpec((pool, Cin, bblk, Vp), lambda nb: (0, 0, nb, 0))
    out_spec = pl.BlockSpec((Cout, bblk, Vp), lambda nb: (0, nb, 0))

    def call(single_buffer_invariants):
        def inv_spec(shape):
            zeros = (0,) * len(shape)
            if single_buffer_invariants:
                # grid-invariant operands: one VMEM copy instead of two
                return pl.BlockSpec(shape, lambda nb: zeros,
                                    pipeline_mode=pl.Buffered(1))
            return pl.BlockSpec(shape, lambda nb: zeros)

        grid_spec = pltpu.PrefetchScalarGridSpec(
            num_scalar_prefetch=0,
            grid=(n_blocks,),
            in_specs=[
                x_spec,
                inv_spec((Vp, Vp)),
                inv_spec((Cout * bblk, K * Cin * bblk)),
                inv_spec((Cout * bblk, 1)),
                inv_spec((Cout * bblk, 1)),
            ],
            out_specs=out_spec,
        )
        return pl.pallas_call(
            functools.partial(_spherical_cheb_bn_pool_kernel, k_order=K),
            out_shape=jax.ShapeDtypeStruct((Cout, b_pad, Vp), jnp.float32),
            grid_spec=grid_spec,
            compiler_params=pltpu.CompilerParams(
                dimension_semantics=("parallel",),
                vmem_limit_bytes=vmem_limit,
            ),
        )(x_r, lap_t, w_big, scale_big, shift_big)

    try:
        out_t = call(True)
    except Exception:
        # TODO(synk): pl.Buffered(1) single-buffering unavailable in this jax
        # build; fall back to default double-buffering of invariant operands.
        out_t = call(False)

    # (Cout, B_pad, Vp) -> [batch x vertices x channels]; drop batch padding
    return jnp.transpose(out_t, (1, 2, 0))[:B]


def reference_forward(x, lap, weight, bias, gamma, beta, run_mean, run_var,
                      *, pool=4, eps=1e-5):
    """Pure-JAX reference mirroring the PyTorch module (eval-mode BN)."""
    B, V, Cin = x.shape
    K = weight.shape[0]
    Vp = V // pool
    xp = x.reshape(B, Vp, pool, Cin).max(axis=2)            # max pooling
    x0 = xp
    acc = jnp.einsum("bvi,io->bvo", x0, weight[0])
    if K > 1:
        x1 = jnp.einsum("uv,bvi->bui", lap, x0)
        acc += jnp.einsum("bvi,io->bvo", x1, weight[1])
        for k in range(2, K):
            x2 = 2.0 * jnp.einsum("uv,bvi->bui", lap, x1) - x0
            acc += jnp.einsum("bvi,io->bvo", x2, weight[k])
            x0, x1 = x1, x2
    z = acc + bias
    y = gamma * (z - run_mean) / jnp.sqrt(run_var + eps) + beta
    return jnp.maximum(y, 0.0)


def make_ring_laplacian(n):
    """Deterministic rescaled Laplacian of a ring graph (L_tilde = L - I = -A/2)."""
    idx = jnp.arange(n)
    adj = jnp.zeros((n, n), jnp.float32)
    adj = adj.at[idx, (idx + 1) % n].set(1.0)
    adj = adj.at[idx, (idx - 1) % n].set(1.0)
    return -0.5 * adj


if __name__ == "__main__":
    B, V, Cin, Cout, K, POOL = 16, 512, 8, 16, 3, 4
    Vp = V // POOL          # 128 -> lane-dense inside the kernel

    key = jax.random.PRNGKey(0)
    k1, k2, k3, k4, k5, k6, k7 = jax.random.split(key, 7)

    x = jax.random.normal(k1, (B, V, Cin), jnp.float32)
    lap = make_ring_laplacian(Vp)

    # ChebConv weights: kaiming-like std, deterministic from PRNGKey(0)
    std = math.sqrt(2.0 / (Cin * K))
    weight = std * jax.random.normal(k2, (K, Cin, Cout), jnp.float32)
    bias = 0.01 * jax.random.normal(k3, (Cout,), jnp.float32)

    # BatchNorm1d parameters / running stats (synthetic, deterministic)
    gamma = 1.0 + 0.1 * jax.random.normal(k4, (Cout,), jnp.float32)
    beta = 0.1 * jax.random.normal(k5, (Cout,), jnp.float32)
    run_mean = 0.1 * jax.random.normal(k6, (Cout,), jnp.float32)
    run_var = jnp.abs(jax.random.normal(k7, (Cout,), jnp.float32)) + 0.5

    out = spherical_cheb_bn_pool(x, lap, weight, bias, gamma, beta, run_mean, run_var,
                                 pool=POOL)
    out = jax.block_until_ready(out)

    ref = reference_forward(x, lap, weight, bias, gamma, beta, run_mean, run_var,
                            pool=POOL)
    np.testing.assert_allclose(np.asarray(out), np.asarray(ref), rtol=1e-5, atol=2e-5)
    assert out.shape == (B, Vp, Cout)

    print("KERNEL_OK")
</pallas_src>

<mosaic_0001>
module attributes {stable_mosaic.version = 11 : i64} {
  func.func @_spherical_cheb_bn_pool_kernel(%arg0: i32, %arg1: memref<4x8x8x128xf32, #tpu.memory_space<vmem>>, %arg2: memref<128x128xf32, #tpu.memory_space<vmem>>, %arg3: memref<128x192xf32, #tpu.memory_space<vmem>>, %arg4: memref<128x1xf32, #tpu.memory_space<vmem>>, %arg5: memref<128x1xf32, #tpu.memory_space<vmem>>, %arg6: memref<16x8x128xf32, #tpu.memory_space<vmem>>) attributes {dimension_semantics = [#tpu.dimension_semantics<parallel>], iteration_bounds = array<i64: 2>, scalar_prefetch = 0 : i64, scratch_operands = 0 : i64, tpu.core_type = #tpu.core_type<tc>, window_params = [{transform_indices = @transform_0, window_bounds = array<i64: 4, 8, 8, 128>}, {pipeline_mode = #tpu.pipeline_mode<synchronous>, transform_indices = @transform_1, window_bounds = array<i64: 128, 128>}, {pipeline_mode = #tpu.pipeline_mode<synchronous>, transform_indices = @transform_2, window_bounds = array<i64: 128, 192>}, {pipeline_mode = #tpu.pipeline_mode<synchronous>, transform_indices = @transform_3, window_bounds = array<i64: 128, 1>}, {pipeline_mode = #tpu.pipeline_mode<synchronous>, transform_indices = @transform_4, window_bounds = array<i64: 128, 1>}, {transform_indices = @transform_5, window_bounds = array<i64: 16, 8, 128>}]} {
    %c0 = arith.constant 0 : index
    %c0_0 = arith.constant 0 : index
    %c0_1 = arith.constant 0 : index
    %c0_2 = arith.constant 0 : index
    %0 = vector.load %arg1[%c0, %c0_0, %c0_1, %c0_2] : memref<4x8x8x128xf32, #tpu.memory_space<vmem>>, vector<1x8x8x128xf32>
    %1 = vector.shape_cast %0 : vector<1x8x8x128xf32> to vector<8x8x128xf32>
    %c1 = arith.constant 1 : index
    %c0_3 = arith.constant 0 : index
    %c0_4 = arith.constant 0 : index
    %c0_5 = arith.constant 0 : index
    %2 = vector.load %arg1[%c1, %c0_3, %c0_4, %c0_5] : memref<4x8x8x128xf32, #tpu.memory_space<vmem>>, vector<1x8x8x128xf32>
    %3 = vector.shape_cast %2 : vector<1x8x8x128xf32> to vector<8x8x128xf32>
    %4 = arith.maximumf %1, %3 : vector<8x8x128xf32>
    %c2 = arith.constant 2 : index
    %c0_6 = arith.constant 0 : index
    %c0_7 = arith.constant 0 : index
    %c0_8 = arith.constant 0 : index
    %5 = vector.load %arg1[%c2, %c0_6, %c0_7, %c0_8] : memref<4x8x8x128xf32, #tpu.memory_space<vmem>>, vector<1x8x8x128xf32>
    %6 = vector.shape_cast %5 : vector<1x8x8x128xf32> to vector<8x8x128xf32>
    %7 = arith.maximumf %4, %6 : vector<8x8x128xf32>
    %c3 = arith.constant 3 : index
    %c0_9 = arith.constant 0 : index
    %c0_10 = arith.constant 0 : index
    %c0_11 = arith.constant 0 : index
    %8 = vector.load %arg1[%c3, %c0_9, %c0_10, %c0_11] : memref<4x8x8x128xf32, #tpu.memory_space<vmem>>, vector<1x8x8x128xf32>
    %9 = vector.shape_cast %8 : vector<1x8x8x128xf32> to vector<8x8x128xf32>
    %10 = arith.maximumf %7, %9 : vector<8x8x128xf32>
    %c0_12 = arith.constant 0 : index
    %c0_13 = arith.constant 0 : index
    %11 = vector.load %arg2[%c0_12, %c0_13] : memref<128x128xf32, #tpu.memory_space<vmem>>, vector<128x128xf32>
    %12 = vector.shape_cast %10 : vector<8x8x128xf32> to vector<64x128xf32>
    %cst = arith.constant dense<0.000000e+00> : vector<64x128xf32>
    %13 = tpu.matmul %12, %11, %cst {dimension_numbers = #tpu.dot_dimension_numbers<[1], [0], [0], [1], [0, 0, 1, 1], [], []>} : vector<64x128xf32>, vector<128x128xf32>, vector<64x128xf32> -> vector<64x128xf32>
    %cst_14 = arith.constant dense<0.000000e+00> : vector<64x128xf32>
    %14 = tpu.matmul %13, %11, %cst_14 {dimension_numbers = #tpu.dot_dimension_numbers<[1], [0], [0], [1], [0, 0, 1, 1], [], []>} : vector<64x128xf32>, vector<128x128xf32>, vector<64x128xf32> -> vector<64x128xf32>
    %cst_15 = arith.constant 2.000000e+00 : f32
    %15 = vector.broadcast %cst_15 : f32 to vector<64x128xf32>
    %16 = arith.mulf %15, %14 : vector<64x128xf32>
    %17 = arith.subf %16, %12 : vector<64x128xf32>
    %18 = tpu.concatenate %12, %13, %17 in 0 : vector<64x128xf32>, vector<64x128xf32>, vector<64x128xf32> -> vector<192x128xf32>
    %c0_16 = arith.constant 0 : index
    %c0_17 = arith.constant 0 : index
    %19 = vector.load %arg3[%c0_16, %c0_17] : memref<128x192xf32, #tpu.memory_space<vmem>>, vector<128x192xf32>
    %cst_18 = arith.constant dense<0.000000e+00> : vector<128x128xf32>
    %20 = tpu.matmul %19, %18, %cst_18 {dimension_numbers = #tpu.dot_dimension_numbers<[1], [0], [0], [1], [0, 0, 1, 1], [], []>} : vector<128x192xf32>, vector<192x128xf32>, vector<128x128xf32> -> vector<128x128xf32>
    %c0_19 = arith.constant 0 : index
    %c0_20 = arith.constant 0 : index
    %21 = vector.load %arg4[%c0_19, %c0_20] : memref<128x1xf32, #tpu.memory_space<vmem>>, vector<128x1xf32>
    %22 = vector.broadcast %21 : vector<128x1xf32> to vector<128x128xf32>
    %23 = arith.mulf %20, %22 : vector<128x128xf32>
    %c0_21 = arith.constant 0 : index
    %c0_22 = arith.constant 0 : index
    %24 = vector.load %arg5[%c0_21, %c0_22] : memref<128x1xf32, #tpu.memory_space<vmem>>, vector<128x1xf32>
    %25 = vector.broadcast %24 : vector<128x1xf32> to vector<128x128xf32>
    %26 = arith.addf %23, %25 : vector<128x128xf32>
    %cst_23 = arith.constant 0.000000e+00 : f32
    %27 = vector.broadcast %cst_23 : f32 to vector<128x128xf32>
    %28 = arith.maximumf %26, %27 : vector<128x128xf32>
    %29 = vector.shape_cast %28 : vector<128x128xf32> to vector<16x8x128xf32>
    %c0_24 = arith.constant 0 : index
    %c0_25 = arith.constant 0 : index
    %c0_26 = arith.constant 0 : index
    %30 = vector.load %arg6[%c0_24, %c0_25, %c0_26] : memref<16x8x128xf32, #tpu.memory_space<vmem>>, vector<16x8x128xf32>
    tpu.vector_store %arg6[%c0_24, %c0_25, %c0_26], %29 {strides = array<i32>} : memref<16x8x128xf32, #tpu.memory_space<vmem>>, vector<16x8x128xf32>,
    return
  }
  func.func @transform_0(%arg0: i32) -> (i32, i32, i32, i32) {
    %c0_i32 = arith.constant 0 : i32
    %c0_i32_0 = arith.constant 0 : i32
    %c0_i32_1 = arith.constant 0 : i32
    %c0_i32_2 = arith.constant 0 : i32
    return %c0_i32, %c0_i32_0, %arg0, %c0_i32_1 : i32, i32, i32, i32
  }
  func.func @transform_1(%arg0: i32) -> (i32, i32) {
    %c0_i32 = arith.constant 0 : i32
    %c0_i32_0 = arith.constant 0 : i32
    %c0_i32_1 = arith.constant 0 : i32
    return %c0_i32, %c0_i32_0 : i32, i32
  }
  func.func @transform_2(%arg0: i32) -> (i32, i32) {
    %c0_i32 = arith.constant 0 : i32
    %c0_i32_0 = arith.constant 0 : i32
    %c0_i32_1 = arith.constant 0 : i32
    return %c0_i32, %c0_i32_0 : i32, i32
  }
  func.func @transform_3(%arg0: i32) -> (i32, i32) {
    %c0_i32 = arith.constant 0 : i32
    %c0_i32_0 = arith.constant 0 : i32
    %c0_i32_1 = arith.constant 0 : i32
    return %c0_i32, %c0_i32_0 : i32, i32
  }
  func.func @transform_4(%arg0: i32) -> (i32, i32) {
    %c0_i32 = arith.constant 0 : i32
    %c0_i32_0 = arith.constant 0 : i32
    %c0_i32_1 = arith.constant 0 : i32
    return %c0_i32, %c0_i32_0 : i32, i32
  }
  func.func @transform_5(%arg0: i32) -> (i32, i32, i32) {
    %c0_i32 = arith.constant 0 : i32
    %c0_i32_0 = arith.constant 0 : i32
    %c0_i32_1 = arith.constant 0 : i32
    return %c0_i32, %arg0, %c0_i32_0 : i32, i32, i32
  }
}

module attributes {stable_mosaic.version = 11 : i64} {
  func.func @_spherical_cheb_bn_pool_kernel(%arg0: i32, %arg1: memref<4x8x8x128xf32, #tpu.memory_space<vmem>>, %arg2: memref<128x128xf32, #tpu.memory_space<vmem>>, %arg3: memref<128x192xf32, #tpu.memory_space<vmem>>, %arg4: memref<128x1xf32, #tpu.memory_space<vmem>>, %arg5: memref<128x1xf32, #tpu.memory_space<vmem>>, %arg6: memref<16x8x128xf32, #tpu.memory_space<vmem>>) attributes {dimension_semantics = [#tpu.dimension_semantics<parallel>], iteration_bounds = array<i64: 2>, scalar_prefetch = 0 : i64, scratch_operands = 0 : i64, tpu.core_type = #tpu.core_type<tc>, window_params = [{transform_indices = @transform_0, window_bounds = array<i64: 4, 8, 8, 128>}, {pipeline_mode = #tpu.pipeline_mode<synchronous>, transform_indices = @transform_1, window_bounds = array<i64: 128, 128>}, {pipeline_mode = #tpu.pipeline_mode<synchronous>, transform_indices = @transform_2, window_bounds = array<i64: 128, 192>}, {pipeline_mode = #tpu.pipeline_mode<synchronous>, transform_indices = @transform_3, window_bounds = array<i64: 128, 1>}, {pipeline_mode = #tpu.pipeline_mode<synchronous>, transform_indices = @transform_4, window_bounds = array<i64: 128, 1>}, {transform_indices = @transform_5, window_bounds = array<i64: 16, 8, 128>}]} {
    %c0 = arith.constant 0 : index
    %c0_0 = arith.constant 0 : index
    %c0_1 = arith.constant 0 : index
    %c0_2 = arith.constant 0 : index
    %0 = vector.load %arg1[%c0, %c0_0, %c0_1, %c0_2] : memref<4x8x8x128xf32, #tpu.memory_space<vmem>>, vector<1x8x8x128xf32>
    %1 = vector.shape_cast %0 : vector<1x8x8x128xf32> to vector<8x8x128xf32>
    %c1 = arith.constant 1 : index
    %c0_3 = arith.constant 0 : index
    %c0_4 = arith.constant 0 : index
    %c0_5 = arith.constant 0 : index
    %2 = vector.load %arg1[%c1, %c0_3, %c0_4, %c0_5] : memref<4x8x8x128xf32, #tpu.memory_space<vmem>>, vector<1x8x8x128xf32>
    %3 = vector.shape_cast %2 : vector<1x8x8x128xf32> to vector<8x8x128xf32>
    %4 = arith.maximumf %1, %3 : vector<8x8x128xf32>
    %c2 = arith.constant 2 : index
    %c0_6 = arith.constant 0 : index
    %c0_7 = arith.constant 0 : index
    %c0_8 = arith.constant 0 : index
    %5 = vector.load %arg1[%c2, %c0_6, %c0_7, %c0_8] : memref<4x8x8x128xf32, #tpu.memory_space<vmem>>, vector<1x8x8x128xf32>
    %6 = vector.shape_cast %5 : vector<1x8x8x128xf32> to vector<8x8x128xf32>
    %7 = arith.maximumf %4, %6 : vector<8x8x128xf32>
    %c3 = arith.constant 3 : index
    %c0_9 = arith.constant 0 : index
    %c0_10 = arith.constant 0 : index
    %c0_11 = arith.constant 0 : index
    %8 = vector.load %arg1[%c3, %c0_9, %c0_10, %c0_11] : memref<4x8x8x128xf32, #tpu.memory_space<vmem>>, vector<1x8x8x128xf32>
    %9 = vector.shape_cast %8 : vector<1x8x8x128xf32> to vector<8x8x128xf32>
    %10 = arith.maximumf %7, %9 : vector<8x8x128xf32>
    %c0_12 = arith.constant 0 : index
    %c0_13 = arith.constant 0 : index
    %11 = vector.load %arg2[%c0_12, %c0_13] : memref<128x128xf32, #tpu.memory_space<vmem>>, vector<128x128xf32>
    %12 = vector.shape_cast %10 : vector<8x8x128xf32> to vector<64x128xf32>
    %cst = arith.constant dense<0.000000e+00> : vector<64x128xf32>
    %13 = tpu.matmul %12, %11, %cst {dimension_numbers = #tpu.dot_dimension_numbers<[1], [0], [0], [1], [0, 0, 1, 1], [], []>} : vector<64x128xf32>, vector<128x128xf32>, vector<64x128xf32> -> vector<64x128xf32>
    %cst_14 = arith.constant dense<0.000000e+00> : vector<64x128xf32>
    %14 = tpu.matmul %13, %11, %cst_14 {dimension_numbers = #tpu.dot_dimension_numbers<[1], [0], [0], [1], [0, 0, 1, 1], [], []>} : vector<64x128xf32>, vector<128x128xf32>, vector<64x128xf32> -> vector<64x128xf32>
    %cst_15 = arith.constant 2.000000e+00 : f32
    %15 = vector.broadcast %cst_15 : f32 to vector<64x128xf32>
    %16 = arith.mulf %15, %14 : vector<64x128xf32>
    %17 = arith.subf %16, %12 : vector<64x128xf32>
    %18 = tpu.concatenate %12, %13, %17 in 0 : vector<64x128xf32>, vector<64x128xf32>, vector<64x128xf32> -> vector<192x128xf32>
    %c0_16 = arith.constant 0 : index
    %c0_17 = arith.constant 0 : index
    %19 = vector.load %arg3[%c0_16, %c0_17] : memref<128x192xf32, #tpu.memory_space<vmem>>, vector<128x192xf32>
    %cst_18 = arith.constant dense<0.000000e+00> : vector<128x128xf32>
    %20 = tpu.matmul %19, %18, %cst_18 {dimension_numbers = #tpu.dot_dimension_numbers<[1], [0], [0], [1], [0, 0, 1, 1], [], []>} : vector<128x192xf32>, vector<192x128xf32>, vector<128x128xf32> -> vector<128x128xf32>
    %c0_19 = arith.constant 0 : index
    %c0_20 = arith.constant 0 : index
    %21 = vector.load %arg4[%c0_19, %c0_20] : memref<128x1xf32, #tpu.memory_space<vmem>>, vector<128x1xf32>
    %22 = vector.broadcast %21 : vector<128x1xf32> to vector<128x128xf32>
    %23 = arith.mulf %20, %22 : vector<128x128xf32>
    %c0_21 = arith.constant 0 : index
    %c0_22 = arith.constant 0 : index
    %24 = vector.load %arg5[%c0_21, %c0_22] : memref<128x1xf32, #tpu.memory_space<vmem>>, vector<128x1xf32>
    %25 = vector.broadcast %24 : vector<128x1xf32> to vector<128x128xf32>
    %26 = arith.addf %23, %25 : vector<128x128xf32>
    %cst_23 = arith.constant 0.000000e+00 : f32
    %27 = vector.broadcast %cst_23 : f32 to vector<128x128xf32>
    %28 = arith.maximumf %26, %27 : vector<128x128xf32>
    %29 = vector.shape_cast %28 : vector<128x128xf32> to vector<16x8x128xf32>
    %c0_24 = arith.constant 0 : index
    %c0_25 = arith.constant 0 : index
    %c0_26 = arith.constant 0 : index
    %30 = vector.load %arg6[%c0_24, %c0_25, %c0_26] : memref<16x8x128xf32, #tpu.memory_space<vmem>>, vector<16x8x128xf32>
    tpu.vector_store %arg6[%c0_24, %c0_25, %c0_26], %29 {strides = array<i32>} : memref<16x8x128xf32, #tpu.memory_space<vmem>>, vector<16x8x128xf32>,
    return
  }
  func.func @transform_0(%arg0: i32) -> (i32, i32, i32, i32) {
    %c0_i32 = arith.constant 0 : i32
    %c0_i32_0 = arith.constant 0 : i32
    %c0_i32_1 = arith.constant 0 : i32
    %c0_i32_2 = arith.constant 0 : i32
    return %c0_i32, %c0_i32_0, %arg0, %c0_i32_1 : i32, i32, i32, i32
  }
  func.func @transform_1(%arg0: i32) -> (i32, i32) {
    %c0_i32 = arith.constant 0 : i32
    %c0_i32_0 = arith.constant 0 : i32
    %c0_i32_1 = arith.constant 0 : i32
    return %c0_i32, %c0_i32_0 : i32, i32
  }
  func.func @transform_2(%arg0: i32) -> (i32, i32) {
    %c0_i32 = arith.constant 0 : i32
    %c0_i32_0 = arith.constant 0 : i32
    %c0_i32_1 = arith.constant 0 : i32
    return %c0_i32, %c0_i32_0 : i32, i32
  }
  func.func @transform_3(%arg0: i32) -> (i32, i32) {
    %c0_i32 = arith.constant 0 : i32
    %c0_i32_0 = arith.constant 0 : i32
    %c0_i32_1 = arith.constant 0 : i32
    return %c0_i32, %c0_i32_0 : i32, i32
  }
  func.func @transform_4(%arg0: i32) -> (i32, i32) {
    %c0_i32 = arith.constant 0 : i32
    %c0_i32_0 = arith.constant 0 : i32
    %c0_i32_1 = arith.constant 0 : i32
    return %c0_i32, %c0_i32_0 : i32, i32
  }
  func.func @transform_5(%arg0: i32) -> (i32, i32, i32) {
    %c0_i32 = arith.constant 0 : i32
    %c0_i32_0 = arith.constant 0 : i32
    %c0_i32_1 = arith.constant 0 : i32
    return %c0_i32, %arg0, %c0_i32_0 : i32, i32, i32
  }
}

</mosaic_0001>

<bundles_post_ra>
// kernel: tpu_custom_call.1
= control target key start
LH: loop header
LB: loop body
LE: loop exit
PB: predicated region body
PF: predicated region fallthrough
CT: control target
= control target key end

     0   :  { %10 = vsyncpa [#allocation4], 0  ;;  %s2344_s0 = inlined_call_operand.vmem [shape: f32[4,8,16,128], index: 0, kind: input, shape index: {}]   ;;  %s2345_s1 = inlined_call_operand.hbm [shape: f32[128,128], index: 1, kind: input, shape index: {}]   ;;  %s2346_s2 = inlined_call_operand.vmem [shape: f32[128,192], index: 2, kind: input, shape index: {}]   ;;  %s2347_s3 = inlined_call_operand.vmem [shape: f32[128,1], index: 3, kind: input, shape index: {}]   ;;  %s2348_s4 = inlined_call_operand.vmem [shape: f32[128,1], index: 4, kind: input, shape index: {}]   ;;  %s2349_s5 = inlined_call_operand.hbm [shape: f32[16,16,128], index: 5, kind: output, shape index: {}]  }
   0x1   :  { %11 = vsyncpa [#allocation5], 0 }
   0x2   :  { %13 = vsyncpa [#allocation5 + $0x1], 0  ;;  %s1756_s18 = smov 0   ;;  %s1758_s19 = smov 0  }
   0x3   :  { %s1760_s20 = smov 0   ;;  %s1762_s21 = smov 0  }
   0x4 LB: > { %s1777_s22 = sadd.s32 4294967295, %s1715_s21   ;;  %s1272_s23 = sadd.s32 4294967294, %s1715_s21   ;;  %s1715_s21 = sphi %s1762_s21, %s2367_s21   ;;  %s1711_s20 = sphi %s1760_s20, %s2366_s20   ;;  %s1707_s19 = sphi %s1758_s19, %s2365_s19   ;;  %s1703_s18 = sphi %s1756_s18, %s2364_s18  }
   0x5   : > { %s1781_s24 = sadd.s32 1, %s1715_s21   ;;  %s26_s25 = sadd.s32 1, %s1711_s20 }
   0x6   : > { %s23_s26 = ssub.s32 %s1715_s21, %s1781_s24  ;;  %p33_p0 = scmp.ne.s32.totalorder %s1711_s20, %s1707_s19 }
   0x7   : > { %p24_p1 = scmp.eq.s32.totalorder %s23_s26, 0  ;;  %p34_p2 = scmp.eq.s32.totalorder %s1715_s21, 0 }
   0x8   : > { %p147_p3 = scmp.eq.s32.totalorder %s1777_s22, 1  ;;  %p152_p4 = scmp.ne.s32.totalorder %s1707_s19, %s1703_s18 }
   0x9   : > { %s1793_s27 = scalar_select %p24_p1, %s1711_s20, %s26_s25  }
   0xa   : > { %p1795_p5 = por %p34_p2, %p33_p0  ;;  %p1799_p6 = por %p147_p3, %p33_p0 }
   0xb   : > { %p153_p7 = scmp.eq.s32.totalorder %s1272_s23, 1  ;;  %p1273_p8 = scmp.ge.s32.totalorder %s1715_s21, 1 }
   0xc   : > { %s2353_s28 = scalar_select %p1795_p5, 1, 0 }
   0xd   : > { %s2354_s29 = scalar_select %p1799_p6, 1, 0 }
   0xe   : > { %p160_p9 = scmp.lt.s32.totalorder %s1715_s21, 3  ;;  %p1805_p10 = por %p153_p7, %p152_p4 }
   0xf   : > { %p2350_p11 = scmp.eq.s32.totalorder %s1777_s22, 0  ;;  %s1717_s7 = smov [#allocation3]  }
  0x10   : > { %s2355_s30 = scalar_select %p1805_p10, 1, 0 }
  0x11   : > { %p1810_p12 = pnand %p1273_p8, %p160_p9  ;;  %s172_s8 = sshll.u32 %s1717_s7, 4  ;;  %s173_s8 = int_to_ptr.vmem [resolvable:$true] %s172_s8 }
  0x12   : > { %s1621_s12 = scalar_lea.hbm %s2345_s1, 2048 }
  0x13   : > { %s2356_s6 = scalar_select %p1810_p12, 1, 0 }
  0x14   : > { %p1568_p13 = pneg %p1810_p12  ;;  %p1622_p1 = scmp.ne.s32.totalorder %s2345_s1, %s1621_s12 }
  0x15   : > { %p1628_p7 = scmp.lt.u32.totalorder %s1621_s12, %s2345_s1 }
  0x16   : > { %p1818_p0 = pnand %p2350_p11, %p1568_p13 }
  0x18   : > { %p1623_p2 = pneg %p1818_p0 }
  0x1a   : > { %p1624_p3 = pnand %p1623_p2, %p1622_p1 }
  0x1c   : > { %p1625_p4 = pneg %p1624_p3 }
  0x1e   : > { %p1630_p8 = pnand %p1628_p7, %p1625_p4 }
  0x20   : > { %1633 = shalt.err (!%p1630_p8)
}
  0x21   : > { %s1634_s17 = scalar_lea.vmem %s173_s8, 2048  ;;  %p1642_p10 = scmp.lt.s32.totalorder %s173_s8, %s173_s8 }
  0x22   : > { %p1635_p9 = scmp.ne.s32.totalorder %s173_s8, %s1634_s17  ;;  %p1643_p6 = scmp.lt.s32.totalorder %s1634_s17, %s1634_s17 }
  0x24   : > { %p1637_p13 = pnand %p1635_p9, %p1623_p2  ;;  %p1644_p12 = por %p1643_p6, %p1642_p10 }
  0x26   : > { %p1638_p11 = pneg %p1637_p13 }
  0x28   : > { %p1645_p5 = pnand %p1644_p12, %p1638_p11 }
  0x2a   : > { %1648 = shalt.err (!%p1645_p5)
}
  0x2b   : > { %s1718_s23 = smov 128   ;;  %s1719_s25 = smov 8  }
  0x2c   : > { %1571 = dma.hbm_to_vmem [thread:$0]  (!%p1818_p0), %s2345_s1, 2048, %s173_s8, [#allocation4], %s1718_s23, %s1718_s23, %s1719_s25  }
  0x2d   : > { %p1275_p1 = scmp.ge.s32.totalorder %s1715_s21, 2 }
  0x2e   : > { %p2358_p2 = scmp.ne.s32.totalorder (!%p1275_p1), %s2353_s28, 0 }
  0x2f   : > { %191 = sbr.rel (%p1275_p1) target bundleno = 74 (0x4a), region = 32 }
  0x36   : > { %194 = sbr.rel (!%p2358_p2) target bundleno = 74 (0x4a), region = 36  ;;  %s196_s10 = sand.u32 (%p2358_p2), 1, %s1711_s20  }
  0x37   : > { %s1277_s11 = sshll.u32 (%p2358_p2), %s1715_s21, 3  ;;  %s1276_s12 = sshll.u32 (%p2358_p2), %s196_s10, 8 }
  0x38   : > { %s1848_s9 = scalar_lea.vmem (%p2358_p2), %s2344_s0, %s1277_s11  ;;  %s1853_s28 = scalar_lea.vmem (%p2358_p2), [#allocation2], %s1276_s12 }
  0x39   : > { %v290_v0 = vld [vmem:[%s1848_s9] sm:$0xff] (%p2358_p2)  ;;  %v292_v1 = vld [vmem:[%s1848_s9 + $0x10] sm:$0xff] (%p2358_p2) }
  0x3a   : > { %v294_v2 = vld [vmem:[%s1848_s9 + $0x20] sm:$0xff] (%p2358_p2)  ;;  %291 = vst [vmem:[%s1853_s28] sm:$0xff] (%p2358_p2), %v290_v0  ;;  %293 = vst [vmem:[%s1853_s28 + $0x8] sm:$0xff] (%p2358_p2), %v292_v1  ;;  %v296_v3 = vld [vmem:[%s1848_s9 + $0x30] sm:$0xff] (%p2358_p2) }
  0x3b   : > { %295 = vst [vmem:[%s1853_s28 + $0x10] sm:$0xff] (%p2358_p2), %v294_v2  ;;  %v298_v4 = vld [vmem:[%s1848_s9 + $0x40] sm:$0xff] (%p2358_p2)  ;;  %v300_v5 = vld [vmem:[%s1848_s9 + $0x50] sm:$0xff] (%p2358_p2)  ;;  %297 = vst [vmem:[%s1853_s28 + $0x18] sm:$0xff] (%p2358_p2), %v296_v3 }
  0x3c   : > { %299 = vst [vmem:[%s1853_s28 + $0x20] sm:$0xff] (%p2358_p2), %v298_v4  ;;  %301 = vst [vmem:[%s1853_s28 + $0x28] sm:$0xff] (%p2358_p2), %v300_v5  ;;  %v302_v6 = vld [vmem:[%s1848_s9 + $0x60] sm:$0xff] (%p2358_p2)  ;;  %v304_v7 = vld [vmem:[%s1848_s9 + $0x70] sm:$0xff] (%p2358_p2) }
  0x3d   : > { %v306_v8 = vld [vmem:[%s1848_s9 + $0x80] sm:$0xff]  ;;  %303 = vst [vmem:[%s1853_s28 + $0x30] sm:$0xff] %v302_v6  ;;  %305 = vst [vmem:[%s1853_s28 + $0x38] sm:$0xff] %v304_v7  ;;  %v308_v9 = vld [vmem:[%s1848_s9 + $0x90] sm:$0xff] }
  0x3e   : > { %307 = vst [vmem:[%s1853_s28 + $0x40] sm:$0xff] %v306_v8  ;;  %v310_v10 = vld [vmem:[%s1848_s9 + $0xa0] sm:$0xff]  ;;  %v312_v11 = vld [vmem:[%s1848_s9 + $0xb0] sm:$0xff]  ;;  %309 = vst [vmem:[%s1853_s28 + $0x48] sm:$0xff] %v308_v9 }
  0x3f   : > { %311 = vst [vmem:[%s1853_s28 + $0x50] sm:$0xff] %v310_v10  ;;  %313 = vst [vmem:[%s1853_s28 + $0x58] sm:$0xff] %v312_v11  ;;  %v314_v12 = vld [vmem:[%s1848_s9 + $0xc0] sm:$0xff]  ;;  %v316_v13 = vld [vmem:[%s1848_s9 + $0xd0] sm:$0xff] }
  0x40   : > { %v318_v14 = vld [vmem:[%s1848_s9 + $0xe0] sm:$0xff]  ;;  %315 = vst [vmem:[%s1853_s28 + $0x60] sm:$0xff] %v314_v12  ;;  %317 = vst [vmem:[%s1853_s28 + $0x68] sm:$0xff] %v316_v13  ;;  %v320_v15 = vld [vmem:[%s1848_s9 + $0xf0] sm:$0xff] }
  0x41   : > { %319 = vst [vmem:[%s1853_s28 + $0x70] sm:$0xff] %v318_v14  ;;  %v322_v16 = vld [vmem:[%s1848_s9 + $0x100] sm:$0xff]  ;;  %v324_v17 = vld [vmem:[%s1848_s9 + $0x110] sm:$0xff]  ;;  %321 = vst [vmem:[%s1853_s28 + $0x78] sm:$0xff] %v320_v15 }
  0x42   : > { %323 = vst [vmem:[%s1853_s28 + $0x80] sm:$0xff] %v322_v16  ;;  %325 = vst [vmem:[%s1853_s28 + $0x88] sm:$0xff] %v324_v17  ;;  %v326_v18 = vld [vmem:[%s1848_s9 + $0x120] sm:$0xff]  ;;  %v328_v19 = vld [vmem:[%s1848_s9 + $0x130] sm:$0xff] }
  0x43   : > { %v330_v20 = vld [vmem:[%s1848_s9 + $0x140] sm:$0xff]  ;;  %327 = vst [vmem:[%s1853_s28 + $0x90] sm:$0xff] %v326_v18  ;;  %329 = vst [vmem:[%s1853_s28 + $0x98] sm:$0xff] %v328_v19  ;;  %v332_v21 = vld [vmem:[%s1848_s9 + $0x150] sm:$0xff] }
  0x44   : > { %331 = vst [vmem:[%s1853_s28 + $0xa0] sm:$0xff] %v330_v20  ;;  %v334_v22 = vld [vmem:[%s1848_s9 + $0x160] sm:$0xff]  ;;  %v336_v23 = vld [vmem:[%s1848_s9 + $0x170] sm:$0xff]  ;;  %333 = vst [vmem:[%s1853_s28 + $0xa8] sm:$0xff] %v332_v21 }
  0x45   : > { %335 = vst [vmem:[%s1853_s28 + $0xb0] sm:$0xff] %v334_v22  ;;  %337 = vst [vmem:[%s1853_s28 + $0xb8] sm:$0xff] %v336_v23  ;;  %v338_v24 = vld [vmem:[%s1848_s9 + $0x180] sm:$0xff]  ;;  %v340_v25 = vld [vmem:[%s1848_s9 + $0x190] sm:$0xff] }
  0x46   : > { %v342_v26 = vld [vmem:[%s1848_s9 + $0x1a0] sm:$0xff]  ;;  %339 = vst [vmem:[%s1853_s28 + $0xc0] sm:$0xff] %v338_v24  ;;  %341 = vst [vmem:[%s1853_s28 + $0xc8] sm:$0xff] %v340_v25  ;;  %v344_v27 = vld [vmem:[%s1848_s9 + $0x1b0] sm:$0xff] }
  0x47   : > { %343 = vst [vmem:[%s1853_s28 + $0xd0] sm:$0xff] %v342_v26  ;;  %v346_v28 = vld [vmem:[%s1848_s9 + $0x1c0] sm:$0xff]  ;;  %v348_v29 = vld [vmem:[%s1848_s9 + $0x1d0] sm:$0xff]  ;;  %345 = vst [vmem:[%s1853_s28 + $0xd8] sm:$0xff] %v344_v27 }
  0x48   : > { %347 = vst [vmem:[%s1853_s28 + $0xe0] sm:$0xff] %v346_v28  ;;  %349 = vst [vmem:[%s1853_s28 + $0xe8] sm:$0xff] %v348_v29  ;;  %v350_v30 = vld [vmem:[%s1848_s9 + $0x1e0] sm:$0xff]  ;;  %v352_v31 = vld [vmem:[%s1848_s9 + $0x1f0] sm:$0xff] }
  0x49   : > { %351 = vst [vmem:[%s1853_s28 + $0xf0] sm:$0xff] %v350_v30  ;;  %353 = vst [vmem:[%s1853_s28 + $0xf8] sm:$0xff] %v352_v31 }
  0x4a PF: > { %p2359_p5 = scmp.ne.s32.totalorder %s2356_s6, 0 }
  0x4b   : > { %s1919_s8 = sand.u32 (!%p2359_p5), 1, %s1707_s19   ;;  %p2360_p6 = scmp.eq.s32.totalorder (!%p2359_p5), %s1777_s22, 0 }
  0x4c   : > { %362 = sbr.rel (%p2359_p5) target bundleno = 861 (0x35d), region = 74  ;;  %s1279_s15 = sshll.u32 (!%p2359_p5), %s1919_s8, 8 }
  0x4d   : > { %s1922_s16 = scalar_lea.vmem (!%p2359_p5), [#allocation2], %s1279_s15 }
  0x53   : > { %1694 = dma.done.wait (%p2360_p6), [#allocation4], 2048   ;;  %p2361_p10 = pmov %p2360_p6 }
  0x54   : > { %v1720_v32 = vmov 0.0|0.0   ;;  %v455_v33 = vld [vmem:[#allocation3] sm:$0xff]  ;;  %v456_v34 = vld [vmem:[#allocation3 + $0x8] sm:$0xff]  ;;  %v457_v35 = vld [vmem:[#allocation3 + $0x10] sm:$0xff]  ;;  %vm729_vm0 = vcmask 523264   ;;  %s1281_s12 = sshll.u32 %s1919_s8, 7 }
  0x55   : > { %1696 = vsyncadd (%p2361_p10), [#allocation4], 4294965248  ;;  %1526 = vmatprep.subr.bf16.mxu0 %v1720_v32  ;;  %v1929_v36 = vpack.c.bf16 %v456_v34, %v455_v33  ;;  %v458_v37 = vld [vmem:[#allocation3 + $0x18] sm:$0xff]  ;;  %v459_v39 = vld [vmem:[#allocation3 + $0x20] sm:$0xff]  ;;  %s2267_s13 = scalar_lea.vmem [#allocation6], %s1281_s12  ;;  %s1323_s14 = sshll.u32 %s1777_s22, 7 }
  0x56   : > { %v1931_v38 = vpack.c.bf16 %v458_v37, %v457_v35  ;;  %v460_v40 = vld [vmem:[#allocation3 + $0x28] sm:$0xff]  ;;  %v461_v42 = vld [vmem:[#allocation3 + $0x30] sm:$0xff]  ;;  %v396_v43 = vld [vmem:[%s1922_s16] sm:$0xff]  ;;  %s1192_s9 = sshll.u32 %s2267_s13, 4  ;;  %s1180_s22 = scalar_lea.sflag [#allocation5], %s1919_s8  ;;  %s2299_s9 = int_to_ptr.vmem [resolvable:$true] %s1192_s9 }
  0x57   : > { %1463 = vmatprep.subr.bf16.mxu1 %v1929_v36  ;;  %v1936_v41 = vpack.c.bf16 %v460_v40, %v459_v39  ;;  %v1282_v44 = vld [vmem:[%s1922_s16 + $0x40] sm:$0xff]  ;;  %v462_v45 = vld [vmem:[#allocation3 + $0x38] sm:$0xff]  ;;  %v397_v48 = vld [vmem:[%s1922_s16 + $0x8] sm:$0xff]  ;;  %s1649_s6 = scalar_lea.vmem %s2299_s9, 2048  ;;  %p2362_p12 = scmp.ne.s32.totalorder %s2354_s29, 0 }
  0x58   : > { %1465 = vmatpush3.bf16.msra.mxu1 %v1929_v36  ;;  %v413_v46 = vmax.f32 %v396_v43, %v1282_v44  ;;  %v1290_v47 = vld [vmem:[%s1922_s16 + $0x80] sm:$0xff]  ;;  %v1283_v50 = vld [vmem:[%s1922_s16 + $0x48] sm:$0xff]  ;;  %v398_v56 = vld [vmem:[%s1922_s16 + $0x10] sm:$0xff]  ;;  %v1950_v59 = vpack.c.bf16 %v462_v45, %v461_v42  ;;  %p1650_p11 = scmp.ne.s32.totalorder %s2299_s9, %s1649_s6  ;;  %s1722_s17 = smov [#allocation6]  }
  0x59   : > { %1467 = vmatprep.subr.bf16.mxu1 %v1931_v38  ;;  %v1298_v49 = vld [vmem:[%s1922_s16 + $0xc0] sm:$0xff]  ;;  %v1291_v51 = vld [vmem:[%s1922_s16 + $0x88] sm:$0xff]  ;;  %v414_v55 = vmax.f32 %v397_v48, %v1283_v50  ;;  %v1284_v57 = vld [vmem:[%s1922_s16 + $0x50] sm:$0xff]  ;;  %s1653_s23 = sshll.u32 %s1722_s17, 4  ;;  %s1654_s23 = int_to_ptr.vmem [resolvable:$false] %s1653_s23 }
  0x5a   : > { %v463_v52 = vld [vmem:[#allocation3 + $0x40] sm:$0xff]  ;;  %v464_v53 = vld [vmem:[#allocation3 + $0x48] sm:$0xff]  ;;  %v430_v54 = vmax.f32 %v413_v46, %v1290_v47  ;;  %v1292_v58 = vld [vmem:[%s1922_s16 + $0x90] sm:$0xff]  ;;  %v415_v61 = vmax.f32 %v398_v56, %v1284_v57  ;;  %p1651_p0 = pnand %p1650_p11, %p2362_p12  ;;  %s1655_s25 = scalar_lea.vmem %s1654_s23, 4096 }
  0x5b   : > { %v1299_v60 = vld [vmem:[%s1922_s16 + $0xc8] sm:$0xff]  ;;  %v399_v62 = vld [vmem:[%s1922_s16 + $0x18] sm:$0xff]  ;;  %v431_v1 = vmax.f32 %v414_v55, %v1291_v51  ;;  %v1300_v2 = vld [vmem:[%s1922_s16 + $0xd0] sm:$0xff]  ;;  %v1971_v16 = vpack.c.bf16 %v464_v53, %v463_v52  ;;  %p1656_p4 = scmp.lt.s32.totalorder %s2299_s9, %s1654_s23  ;;  %p1657_p7 = scmp.lt.s32.totalorder %s1655_s25, %s1649_s6 }
  0x5c   : > { %1469 = vmatpush3.bf16.msra.mxu1 %v1931_v38  ;;  %v1285_v63 = vld [vmem:[%s1922_s16 + $0x58] sm:$0xff]  ;;  %v1955_v0 = vmax.f32 %v430_v54, %v1298_v49  ;;  %v400_v5 = vld [vmem:[%s1922_s16 + $0x20] sm:$0xff]  ;;  %v432_v6 = vmax.f32 %v415_v61, %v1292_v58  ;;  %v401_v13 = vld [vmem:[%s1922_s16 + $0x28] sm:$0xff]  ;;  %p1652_p3 = pneg %p1651_p0 }
  0x5d   : > { %1471 = vmatprep.subr.bf16.mxu1 %v1936_v41  ;;  %v416_v3 = vmax.f32 %v399_v62, %v1285_v63  ;;  %v1293_v4 = vld [vmem:[%s1922_s16 + $0x98] sm:$0xff]  ;;  %v1286_v8 = vld [vmem:[%s1922_s16 + $0x60] sm:$0xff]  ;;  %v1965_v10 = vmax.f32 %v431_v1, %v1299_v60  ;;  %v1287_v14 = vld [vmem:[%s1922_s16 + $0x68] sm:$0xff]  ;;  %p1658_p8 = por %p1657_p7, %p1656_p4 }
  0x5e   : > { %v1301_v7 = vld [vmem:[%s1922_s16 + $0xd8] sm:$0xff]  ;;  %v1294_v9 = vld [vmem:[%s1922_s16 + $0xa0] sm:$0xff]  ;;  %1406 = vmatprep.mubr.f32.mxu1 %v1955_v0  ;;  %v417_v12 = vmax.f32 %v400_v5, %v1286_v8  ;;  %v1295_v15 = vld [vmem:[%s1922_s16 + $0xa8] sm:$0xff]  ;;  %v418_v17 = vmax.f32 %v401_v13, %v1287_v14  ;;  %v1975_v22 = vmax.f32 %v432_v6, %v1300_v2  ;;  %v1721_v6 = vmov 0  }
  0x5f   : > { %v433_v11 = vmax.f32 %v416_v3, %v1293_v4  ;;  %v465_v18 = vld [vmem:[#allocation3 + $0x50] sm:$0xff]  ;;  %v466_v19 = vld [vmem:[#allocation3 + $0x58] sm:$0xff]  ;;  %v1527_v21 = vpack.c.bf16 %v1965_v10, %v1955_v0  ;;  %v1302_v24 = vld [vmem:[%s1922_s16 + $0xe0] sm:$0xff]  ;;  %1620 = vset.pattern.permute.xlu1 %v1721_v6  ;;  %1619 = vset.pattern.permute.xlu0 %v1721_v6  ;;  %p1659_p9 = pnand %p1658_p8, %p1652_p3 }
  0x60   : > { %1473 = vmatpush3.bf16.msra.mxu1 %v1936_v41  ;;  %v434_v20 = vmax.f32 %v417_v12, %v1294_v9  ;;  %v435_v25 = vmax.f32 %v418_v17, %v1295_v15  ;;  %v1303_v26 = vld [vmem:[%s1922_s16 + $0xe8] sm:$0xff]  ;;  %v1482_v27 = vpack.c.bf16 %v466_v19, %v465_v18  ;;  %v467_v29 = vld [vmem:[#allocation3 + $0x60] sm:$0xff]  ;;  %v469_v37 = vld [vmem:[#allocation3 + $0x70] sm:$0xff] }
  0x61   : > { %1475 = vmatprep.subr.bf16.mxu1 %v1950_v59  ;;  %v1977_v23 = vmax.f32 %v433_v11, %v1301_v7  ;;  %1528 = vmatpush1.bf16.msra.mxu0 %v1527_v21  ;;  %v468_v30 = vld [vmem:[#allocation3 + $0x68] sm:$0xff]  ;;  %v470_v39 = vld [vmem:[#allocation3 + $0x78] sm:$0xff]  ;;  %v402_v42 = vld [vmem:[%s1922_s16 + $0x30] sm:$0xff] }
  0x62   : > { %1529 = vmatprep.subr.bf16.mxu0 %v1720_v32  ;;  %v1986_v31 = vmax.f32 %v434_v20, %v1302_v24  ;;  %v1988_v33 = vmax.f32 %v435_v25, %v1303_v26  ;;  %v1486_v35 = vpack.c.bf16 %v468_v30, %v467_v29  ;;  %v1490_v40 = vpack.c.bf16 %v470_v39, %v469_v37  ;;  %v1288_v43 = vld [vmem:[%s1922_s16 + $0x70] sm:$0xff]  ;;  %v403_v45 = vld [vmem:[%s1922_s16 + $0x38] sm:$0xff]  ;;  %v698_v3 = vld [vmem:[%s2346_s2 + $0x8] sm:$0xff] }
  0x63   : > { %v1530_v28 = vpack.c.bf16 %v1977_v23, %v1975_v22  ;;  %v419_v44 = vmax.f32 %v402_v42, %v1288_v43  ;;  %v1289_v46 = vld [vmem:[%s1922_s16 + $0x78] sm:$0xff]  ;;  %v1296_v47 = vld [vmem:[%s1922_s16 + $0xb0] sm:$0xff]  ;;  %1306 = vmatprep.mubr.msk.f32.mxu0 %vm729_vm0, %v698_v3  ;;  %v923_v5 = vld [vmem:[%s2347_s3] sm:$0xff] }
  0x64   : > { %1477 = vmatpush3.bf16.msra.mxu1 %v1950_v59  ;;  %v1533_v34 = vpack.c.bf16 %v1988_v33, %v1986_v31  ;;  %v420_v48 = vmax.f32 %v403_v45, %v1289_v46  ;;  %v1297_v50 = vld [vmem:[%s1922_s16 + $0xb8] sm:$0xff]  ;;  %v1304_v51 = vld [vmem:[%s1922_s16 + $0xf0] sm:$0xff]  ;;  %941 = vperm.xlu0 %1619, %v923_v5   ;;  %v924_v8 = vld [vmem:[%s2347_s3 + $0x8] sm:$0xff] }
  0x65   : > { %1479 = vmatprep.subr.bf16.mxu1 %v1971_v16  ;;  %1531 = vmatpush1.bf16.msra.mxu0 %v1530_v28  ;;  %v436_v49 = vmax.f32 %v419_v44, %v1296_v47  ;;  %v1305_v54 = vld [vmem:[%s1922_s16 + $0xf8] sm:$0xff]  ;;  %v925_v4 = vld [vmem:[%s2347_s3 + $0x10] sm:$0xff]  ;;  %v928_v9 = vld [vmem:[%s2347_s3 + $0x28] sm:$0xff]  ;;  %s2297_s16 = scalar_lea.hbm %s2349_s5, %s1323_s14 }
  0x66   : > { %1532 = vmatprep.subr.bf16.mxu0 %v1720_v32  ;;  %v437_v52 = vmax.f32 %v420_v48, %v1297_v50  ;;  %951 = vperm.xlu1 %1620, %v925_v4   ;;  %v926_v7 = vld [vmem:[%s2347_s3 + $0x18] sm:$0xff]  ;;  %v927_v11 = vld [vmem:[%s2347_s3 + $0x20] sm:$0xff]  ;;  %v929_v13 = vld [vmem:[%s2347_s3 + $0x30] sm:$0xff] }
  0x67   : > { %v2009_v53 = vmax.f32 %v436_v49, %v1304_v51  ;;  %v930_v12 = vld [vmem:[%s2347_s3 + $0x38] sm:$0xff]  ;;  %v932_v14 = vld [vmem:[%s2347_s3 + $0x48] sm:$0xff]  ;;  %v931_v15 = vld [vmem:[%s2347_s3 + $0x40] sm:$0xff] }
  0x68   : > { %1481 = vmatpush3.bf16.msra.mxu1 %v1971_v16  ;;  %v2015_v55 = vmax.f32 %v437_v52, %v1305_v54  ;;  %946 = vperm.xlu0 %1619, %v924_v8   ;;  %v933_v17 = vld [vmem:[%s2347_s3 + $0x50] sm:$0xff]  ;;  %v936_v18 = vld [vmem:[%s2347_s3 + $0x68] sm:$0xff]  ;;  %v935_v19 = vld [vmem:[%s2347_s3 + $0x60] sm:$0xff] }
  0x69   : > { %1483 = vmatprep.subr.bf16.mxu1 %v1482_v27  ;;  %1534 = vmatpush1.bf16.msra.mxu0 %v1533_v34  ;;  %v938_v20 = vld [vmem:[%s2347_s3 + $0x78] sm:$0xff]  ;;  %v937_v21 = vld [vmem:[%s2347_s3 + $0x70] sm:$0xff]  ;;  %v1036_v24 = vld [vmem:[%s2348_s4 + $0x8] sm:$0xff] }
  0x6a   : > { %1535 = vmatprep.subr.bf16.mxu0 %v1720_v32  ;;  %956 = vperm.xlu1 %1620, %v926_v7   ;;  %v1035_v25 = vld [vmem:[%s2348_s4] sm:$0xff]  ;;  %v1038_v26 = vld [vmem:[%s2348_s4 + $0x18] sm:$0xff]  ;;  %v1040_v28 = vld [vmem:[%s2348_s4 + $0x28] sm:$0xff] }
  0x6b   : > { %v1039_v29 = vld [vmem:[%s2348_s4 + $0x20] sm:$0xff]  ;;  %v1042_v30 = vld [vmem:[%s2348_s4 + $0x38] sm:$0xff]  ;;  %v1041_v34 = vld [vmem:[%s2348_s4 + $0x30] sm:$0xff] }
  0x6c   : > { %1485 = vmatpush3.bf16.msra.mxu1 %v1482_v27  ;;  %961 = vperm.xlu0 %1619, %v927_v11   ;;  %v1043_v37 = vld [vmem:[%s2348_s4 + $0x40] sm:$0xff]  ;;  %v1046_v39 = vld [vmem:[%s2348_s4 + $0x58] sm:$0xff]  ;;  %v1048_v42 = vld [vmem:[%s2348_s4 + $0x68] sm:$0xff] }
  0x6d   : > { %1487 = vmatprep.subr.bf16.mxu1 %v1486_v35  ;;  %v1047_v43 = vld [vmem:[%s2348_s4 + $0x60] sm:$0xff]  ;;  %v1050_v44 = vld [vmem:[%s2348_s4 + $0x78] sm:$0xff]  ;;  %v1049_v45 = vld [vmem:[%s2348_s4 + $0x70] sm:$0xff] }
  0x6e   : > { %966 = vperm.xlu1 %1620, %v928_v9   ;;  %v704_v6 = vld [vmem:[%s2346_s2 + $0x38] sm:$0xff]  ;;  %v703_v7 = vld [vmem:[%s2346_s2 + $0x30] sm:$0xff]  ;;  %v706_v8 = vld [vmem:[%s2346_s2 + $0x48] sm:$0xff] }
  0x6f   : > { %v705_v9 = vld [vmem:[%s2346_s2 + $0x40] sm:$0xff]  ;;  %v708_v11 = vld [vmem:[%s2346_s2 + $0x58] sm:$0xff] }
  0x70   : > { %1489 = vmatpush3.bf16.msra.mxu1 %v1486_v35  ;;  %971 = vperm.xlu0 %1619, %v929_v13   ;;  %v710_v13 = vld [vmem:[%s2346_s2 + $0x68] sm:$0xff] }
  0x71   : > { %1491 = vmatprep.subr.bf16.mxu1 %v1490_v40 }
  0x72   : > { %976 = vperm.xlu1 %1620, %v930_v12   ;;  %v707_v12 = vld [vmem:[%s2346_s2 + $0x50] sm:$0xff] }
  0x74   : > { %1493 = vmatpush3.bf16.msra.mxu1 %v1490_v40  ;;  %981 = vperm.xlu0 %1619, %v931_v15   ;;  %v712_v15 = vld [vmem:[%s2346_s2 + $0x78] sm:$0xff] }
  0x75   : > { %1495 = vmatprep.subr.bf16.mxu1 %v1929_v36 }
  0x76   : > { %986 = vperm.xlu1 %1620, %v932_v14   ;;  %v709_v14 = vld [vmem:[%s2346_s2 + $0x60] sm:$0xff] }
  0x77   : > { %1407 = vmatmul.mubr.f32.vlgmr.msra.gmra.mrb[0].mxu1 %v1965_v10 }
  0x78   : > { %1409 = vmatprep.mubr.f32.mxu1 %v1975_v22  ;;  %1497 = vmatpush3.bf16.msra.mxu1 %v1929_v36  ;;  %v1536_v36 = vpack.c.bf16 %v2015_v55, %v2009_v53 }
  0x79   : > { %1499 = vmatprep.subr.bf16.mxu1 %v1931_v38  ;;  %991 = vperm.xlu0 %1619, %v933_v17   ;;  %v714_v17 = vld [vmem:[%s2346_s2 + $0x88] sm:$0xff] }
  0x7a   : > { %1537 = vmatpush1.bf16.msra.mxu0 %v1536_v36 }
  0x7b   : > { %1410 = vmatmul.mubr.f32.gmra.mrb[2].mxu1 %v1977_v23  ;;  %1538 = vmatprep.subr.bf16.mxu0 %v1720_v32 }
  0x7c   : > { %1412 = vmatprep.mubr.f32.mxu1 %v1986_v31  ;;  %1501 = vmatpush3.bf16.msra.mxu1 %v1931_v38 }
  0x7d   : > { %1503 = vmatprep.subr.bf16.mxu1 %v1936_v41  ;;  %1001 = vperm.xlu0 %1619, %v935_v19   ;;  %v716_v19 = vld [vmem:[%s2346_s2 + $0x98] sm:$0xff] }
  0x7f   : > { %1413 = vmatmul.mubr.f32.gmra.mrb[4].mxu1 %v1988_v33 }
  0x80   : > { %1415 = vmatprep.mubr.f32.mxu1 %v2009_v53  ;;  %1505 = vmatpush3.bf16.msra.mxu1 %v1936_v41 }
  0x81   : > { %1507 = vmatprep.subr.bf16.mxu1 %v1950_v59  ;;  %1011 = vperm.xlu0 %1619, %v937_v21   ;;  %v718_v21 = vld [vmem:[%s2346_s2 + $0xa8] sm:$0xff] }
  0x83   : > { %1416 = vmatmul.mubr.f32.gmra.mrb[6].mxu1 %v2015_v55 }
  0x84   : > { %1509 = vmatpush3.bf16.msra.mxu1 %v1950_v59 }
  0x85   : > { %1511 = vmatprep.subr.bf16.mxu1 %v1971_v16  ;;  %1053 = vperm.xlu0 %1619, %v1035_v25   ;;  %v720_v25 = vld [vmem:[%s2346_s2 + $0xb8] sm:$0xff] }
  0x88   : > { %1513 = vmatpush3.bf16.msra.mxu1 %v1971_v16  ;;  %v934_v16 = vld [vmem:[%s2347_s3 + $0x58] sm:$0xff] }
  0x89   : > { %1515 = vmatprep.subr.bf16.mxu1 %v1482_v27  ;;  %996 = vperm.xlu1 %1620, %v934_v16   ;;  %v711_v16 = vld [vmem:[%s2346_s2 + $0x70] sm:$0xff] }
  0x8c   : > { %1517 = vmatpush3.bf16.msra.mxu1 %v1482_v27  ;;  %v1037_v27 = vld [vmem:[%s2348_s4 + $0x10] sm:$0xff] }
  0x8d   : > { %1519 = vmatprep.subr.bf16.mxu1 %v1486_v35  ;;  %1006 = vperm.xlu1 %1620, %v936_v18   ;;  %v713_v18 = vld [vmem:[%s2346_s2 + $0x80] sm:$0xff] }
  0x8e   : > { %1063 = vperm.xlu0 %1619, %v1037_v27   ;;  %v722_v27 = vld [vmem:[%s2346_s2 + $0xc8] sm:$0xff] }
  0x90   : > { %1521 = vmatpush3.bf16.msra.mxu1 %v1486_v35  ;;  %v1044_v35 = vld [vmem:[%s2348_s4 + $0x48] sm:$0xff] }
  0x91   : > { %1523 = vmatprep.subr.bf16.mxu1 %v1490_v40  ;;  %1016 = vperm.xlu1 %1620, %v938_v20   ;;  %v715_v20 = vld [vmem:[%s2346_s2 + $0x90] sm:$0xff] }
  0x92   : > { %1073 = vperm.xlu0 %1619, %v1039_v29   ;;  %v724_v29 = vld [vmem:[%s2346_s2 + $0xd8] sm:$0xff] }
  0x94   : > { %1525 = vmatpush3.bf16.msra.mxu1 %v1490_v40  ;;  %v1045_v40 = vld [vmem:[%s2348_s4 + $0x50] sm:$0xff] }
  0x95   : > { %1058 = vperm.xlu1 %1620, %v1036_v24   ;;  %v717_v24 = vld [vmem:[%s2346_s2 + $0xa0] sm:$0xff] }
  0x96   : > { %1083 = vperm.xlu0 %1619, %v1041_v34   ;;  %v726_v34 = vld [vmem:[%s2346_s2 + $0xe8] sm:$0xff] }
  0x99   : > { %1068 = vperm.xlu1 %1620, %v1038_v26   ;;  %v719_v26 = vld [vmem:[%s2346_s2 + $0xb0] sm:$0xff] }
  0x9a   : > { %1093 = vperm.xlu0 %1619, %v1043_v37   ;;  %v728_v37 = vld [vmem:[%s2346_s2 + $0xf8] sm:$0xff] }
  0x9d   : > { %1078 = vperm.xlu1 %1620, %v1040_v28   ;;  %v721_v28 = vld [vmem:[%s2346_s2 + $0xc0] sm:$0xff] }
  0x9e   : > { %1103 = vperm.xlu0 %1619, %v1045_v40  }
  0xa1   : > { %1088 = vperm.xlu1 %1620, %v1042_v30   ;;  %v723_v30 = vld [vmem:[%s2346_s2 + $0xd0] sm:$0xff] }
  0xa2   : > { %1113 = vperm.xlu0 %1619, %v1047_v43  }
  0xa5   : > { %1098 = vperm.xlu1 %1620, %v1044_v35   ;;  %v725_v35 = vld [vmem:[%s2346_s2 + $0xe0] sm:$0xff] }
  0xa6   : > { %1123 = vperm.xlu0 %1619, %v1049_v45  }
  0xa9   : > { %1108 = vperm.xlu1 %1620, %v1046_v39   ;;  %v727_v39 = vld [vmem:[%s2346_s2 + $0xf0] sm:$0xff] }
  0xad   : > { %1118 = vperm.xlu1 %1620, %v1048_v42  }
  0xb1   : > { %1128 = vperm.xlu1 %1620, %v1050_v44  }
  0xe3   : > { %v942_v40 = vpop.permute.xlu0 %941 }
  0xe5   : > { %v952_v42 = vpop.permute.xlu1 %951 }
  0xe7   : > { %v947_v43 = vpop.permute.xlu0 %946 }
  0xe9   : > { %v957_v44 = vpop.permute.xlu1 %956 }
  0xeb   : > { %v962_v45 = vpop.permute.xlu0 %961 }
 0x14a   : > { %v1408_v38 = vpop.f32.mrb[0].mxu1 }
 0x14b   : > { %v537_v41 = vpop.f32.mrb[1].mxu1 }
 0x14c   : > { %v1539_v56 = vpack.c.bf16 %v1408_v38, %v537_v41  ;;  %1450 = vmatprep.mubr.f32.mxu1 %v537_v41 }
 0x14d   : > { %1451 = vmatmul.mubr.f32.vlgmr.msra.gmra.mrb[8].mxu1 %v1408_v38 }
 0x14e   : > { %v1411_v57 = vpop.f32.mrb[2].mxu1  ;;  %1540 = vmatpush1.bf16.msra.mxu0 %v1539_v56 }
 0x14f   : > { %v547_v58 = vpop.f32.mrb[3].mxu1  ;;  %1541 = vmatprep.subr.bf16.mxu0 %v1720_v32 }
 0x150   : > { %v1542_v59 = vpack.c.bf16 %v1411_v57, %v547_v58  ;;  %1453 = vmatprep.mubr.f32.mxu1 %v547_v58 }
 0x151   : > { %1454 = vmatmul.mubr.f32.gmra.mrb[10].mxu1 %v1411_v57 }
 0x152   : > { %v1414_v60 = vpop.f32.mrb[4].mxu1  ;;  %1543 = vmatpush1.bf16.msra.mxu0 %v1542_v59 }
 0x153   : > { %v557_v61 = vpop.f32.mrb[5].mxu1  ;;  %1544 = vmatprep.subr.bf16.mxu0 %v1720_v32 }
 0x154   : > { %v1545_v62 = vpack.c.bf16 %v1414_v60, %v557_v61  ;;  %1456 = vmatprep.mubr.f32.mxu1 %v557_v61 }
 0x155   : > { %1457 = vmatmul.mubr.f32.gmra.mrb[12].mxu1 %v1414_v60 }
 0x156   : > { %v1417_v63 = vpop.f32.mrb[6].mxu1  ;;  %1546 = vmatpush1.bf16.msra.mxu0 %v1545_v62 }
 0x157   : > { %v567_v1 = vpop.f32.mrb[7].mxu1  ;;  %1547 = vmatprep.subr.bf16.mxu0 %v1720_v32 }
 0x158   : > { %v1548_v2 = vpack.c.bf16 %v1417_v63, %v567_v1  ;;  %1459 = vmatprep.mubr.f32.mxu1 %v567_v1 }
 0x159   : > { %1460 = vmatmul.mubr.f32.gmra.mrb[14].mxu1 %v1417_v63 }
 0x15a   : > { %1549 = vmatpush1.bf16.msra.mxu0 %v1548_v2 }
 0x15b   : > { %1550 = vmatprep.subr.bf16.mxu0 %v1720_v32 }
 0x220   : > { %v1452_v46 = vpop.f32.mrb[8].mxu1 }
 0x221   : > { %v682_v47 = vmul.f32 2.0, %v1452_v46  ;;  %v642_v48 = vpop.f32.mrb[9].mxu1  ;;  %v967_v46 = vpop.permute.xlu1 %966 }
 0x222   : > { %v681_v49 = vmul.f32 2.0, %v642_v48 }
 0x223   : > { %v690_v50 = vsub.f32 %v682_v47, %v1965_v10  ;;  %v972_v47 = vpop.permute.xlu0 %971 }
 0x224   : > { %v689_v51 = vsub.f32 %v681_v49, %v1955_v0  ;;  %v1455_v52 = vpop.f32.mrb[10].mxu1 }
 0x225   : > { %v684_v54 = vmul.f32 2.0, %v1455_v52  ;;  %v652_v36 = vpop.f32.mrb[11].mxu1  ;;  %v977_v48 = vpop.permute.xlu1 %976 }
 0x226   : > { %v683_v38 = vmul.f32 2.0, %v652_v36  ;;  %v1551_v41 = vpack.c.bf16 %v690_v50, %v689_v51 }
 0x227   : > { %v692_v56 = vsub.f32 %v684_v54, %v1977_v23  ;;  %v2250_v49 = vpop.permute.xlu0 %981 }
 0x228   : > { %v691_v57 = vsub.f32 %v683_v38, %v1975_v22  ;;  %v1458_v58 = vpop.f32.mrb[12].mxu1  ;;  %1552 = vmatpush1.bf16.msra.mxu0 %v1551_v41 }
 0x229   : > { %v686_v59 = vmul.f32 2.0, %v1458_v58  ;;  %v662_v60 = vpop.f32.mrb[13].mxu1  ;;  %1553 = vmatprep.subr.bf16.mxu0 %v1720_v32  ;;  %v2252_v50 = vpop.permute.xlu1 %986 }
 0x22a   : > { %v685_v61 = vmul.f32 2.0, %v662_v60  ;;  %v1554_v62 = vpack.c.bf16 %v692_v56, %v691_v57 }
 0x22b   : > { %v694_v10 = vsub.f32 %v686_v59, %v1988_v33  ;;  %v700_v33 = vld [vmem:[%s2346_s2 + $0x18] sm:$0xff]  ;;  %v2254_v51 = vpop.permute.xlu0 %991 }
 0x22c   : > { %v693_v0 = vsub.f32 %v685_v61, %v1986_v31  ;;  %v1461_v63 = vpop.f32.mrb[14].mxu1  ;;  %1555 = vmatpush1.bf16.msra.mxu0 %v1554_v62  ;;  %v697_v31 = vld [vmem:[%s2346_s2] sm:$0xff] }
 0x22d   : > { %v688_v1 = vmul.f32 2.0, %v1461_v63  ;;  %v672_v2 = vpop.f32.mrb[15].mxu1  ;;  %1556 = vmatprep.subr.bf16.mxu0 %v1720_v32  ;;  %v2256_v52 = vpop.permute.xlu1 %996 }
 0x22e   : > { %v687_v23 = vmul.f32 2.0, %v672_v2  ;;  %v1557_v22 = vpack.c.bf16 %v694_v10, %v693_v0 }
 0x22f   : > { %v696_v3 = vsub.f32 %v688_v1, %v2015_v55  ;;  %v701_v55 = vld [vmem:[%s2346_s2 + $0x20] sm:$0xff]  ;;  %v2258_v54 = vpop.permute.xlu0 %1001 }
 0x230   : > { %v695_v4 = vsub.f32 %v687_v23, %v2009_v53  ;;  %1558 = vmatpush1.bf16.msra.mxu0 %v1557_v22  ;;  %v699_v53 = vld [vmem:[%s2346_s2 + $0x10] sm:$0xff] }
 0x231   : > { %1559 = vmatprep.subr.bf16.mxu0 %v1720_v32  ;;  %v702_v32 = vld [vmem:[%s2346_s2 + $0x28] sm:$0xff]  ;;  %v2260_v36 = vpop.permute.xlu1 %1006 }
 0x232   : > { %v1560_v5 = vpack.c.bf16 %v696_v3, %v695_v4 }
 0x233   : > { %v2262_v38 = vpop.permute.xlu0 %1011 }
 0x234   : > { %1561 = vmatpush1.bf16.msra.mxu0 %v1560_v5 }
 0x235   : > { %v2264_v41 = vpop.permute.xlu1 %1016 }
 0x237   : > { %843 = vmatmul.mubr.f32.vlgmr.msra.gmra.mrb[0].mxu0 %v697_v31  ;;  %v1054_v59 = vpop.permute.xlu0 %1053 }
 0x238   : > { %1307 = vmatprep.mubr.msk.f32.mxu0 %vm729_vm0, %v700_v33 }
 0x239   : > { %v1059_v63 = vpop.permute.xlu1 %1058 }
 0x23b   : > { %848 = vmatmul.mubr.f32.gmra.mrb[2].mxu0 %v699_v53  ;;  %v1064_v4 = vpop.permute.xlu0 %1063 }
 0x23c   : > { %1308 = vmatprep.mubr.msk.f32.mxu0 %vm729_vm0, %v702_v32 }
 0x23f   : > { %853 = vmatmul.mubr.f32.gmra.mrb[4].mxu0 %v701_v55  ;;  %v1069_v55 = vpop.permute.xlu1 %1068 }
 0x240   : > { %1309 = vmatprep.mubr.msk.f32.mxu0 %vm729_vm0, %v704_v6 }
 0x243   : > { %858 = vmatmul.mubr.f32.gmra.mrb[6].mxu0 %v703_v7 }
 0x244   : > { %1310 = vmatprep.mubr.msk.f32.mxu0 %vm729_vm0, %v706_v8 }
 0x247   : > { %863 = vmatmul.mubr.f32.gmra.mrb[8].mxu0 %v705_v9 }
 0x248   : > { %1311 = vmatprep.mubr.msk.f32.mxu0 %vm729_vm0, %v708_v11 }
 0x24b   : > { %868 = vmatmul.mubr.f32.gmra.mrb[10].mxu0 %v707_v12  ;;  %v1074_v12 = vpop.permute.xlu0 %1073 }
 0x24c   : > { %1312 = vmatprep.mubr.msk.f32.mxu0 %vm729_vm0, %v710_v13 }
 0x24f   : > { %873 = vmatmul.mubr.f32.gmra.mrb[12].mxu0 %v709_v14 }
 0x250   : > { %1313 = vmatprep.mubr.msk.f32.mxu0 %vm729_vm0, %v712_v15 }
 0x253   : > { %878 = vmatmul.mubr.f32.gmra.mrb[14].mxu0 %v711_v16 }
 0x254   : > { %1314 = vmatprep.mubr.msk.f32.mxu0 %vm729_vm0, %v714_v17 }
 0x257   : > { %883 = vmatmul.mubr.f32.gmra.mrb[16].mxu0 %v713_v18  ;;  %v1079_v18 = vpop.permute.xlu1 %1078 }
 0x258   : > { %1315 = vmatprep.mubr.msk.f32.mxu0 %vm729_vm0, %v716_v19 }
 0x25b   : > { %888 = vmatmul.mubr.f32.gmra.mrb[18].mxu0 %v715_v20 }
 0x25c   : > { %1316 = vmatprep.mubr.msk.f32.mxu0 %vm729_vm0, %v718_v21 }
 0x25f   : > { %893 = vmatmul.mubr.f32.gmra.mrb[20].mxu0 %v717_v24 }
 0x260   : > { %1317 = vmatprep.mubr.msk.f32.mxu0 %vm729_vm0, %v720_v25 }
 0x263   : > { %898 = vmatmul.mubr.f32.gmra.mrb[22].mxu0 %v719_v26  ;;  %v1084_v26 = vpop.permute.xlu0 %1083 }
 0x264   : > { %1318 = vmatprep.mubr.msk.f32.mxu0 %vm729_vm0, %v722_v27 }
 0x267   : > { %903 = vmatmul.mubr.f32.gmra.mrb[24].mxu0 %v721_v28 }
 0x268   : > { %1319 = vmatprep.mubr.msk.f32.mxu0 %vm729_vm0, %v724_v29 }
 0x26b   : > { %908 = vmatmul.mubr.f32.gmra.mrb[26].mxu0 %v723_v30 }
 0x26c   : > { %1320 = vmatprep.mubr.msk.f32.mxu0 %vm729_vm0, %v726_v34 }
 0x26f   : > { %913 = vmatmul.mubr.f32.gmra.mrb[28].mxu0 %v725_v35  ;;  %v1089_v35 = vpop.permute.xlu1 %1088 }
 0x270   : > { %1321 = vmatprep.mubr.msk.f32.mxu0 %vm729_vm0, %v728_v37 }
 0x273   : > { %918 = vmatmul.mubr.f32.gmra.mrb[30].mxu0 %v727_v39 }
 0x30a   : > { %v844_v56 = vpop.f32.mrb[0].mxu0 }
 0x30b   : > { %v1019_v57 = vmul.f32 %v942_v40, %v844_v56  ;;  %v846_v58 = vpop.f32.mrb[1].mxu0 }
 0x30d   : > { %v1131_v60 = vadd.f32 %v1054_v59, %v1019_v57 }
 0x30e   : > { %v849_v61 = vpop.f32.mrb[2].mxu0 }
 0x30f   : > { %v1147_v62 = vmax.f32 %v1131_v60, 0.0  ;;  %v1020_v10 = vmul.f32 %v947_v43, %v849_v61  ;;  %v851_v0 = vpop.f32.mrb[3].mxu0 }
 0x311   : > { %1163 = vst [vmem:[%s2267_s13] sm:$0xff] %v1147_v62  ;;  %v1132_v1 = vadd.f32 %v1059_v63, %v1020_v10 }
 0x312   : > { %v854_v2 = vpop.f32.mrb[4].mxu0 }
 0x313   : > { %v1148_v23 = vmax.f32 %v1132_v1, 0.0  ;;  %v1021_v22 = vmul.f32 %v952_v42, %v854_v2  ;;  %v856_v3 = vpop.f32.mrb[5].mxu0 }
 0x315   : > { %1164 = vst [vmem:[%s2267_s13 + $0x8] sm:$0xff] %v1148_v23  ;;  %v1133_v5 = vadd.f32 %v1064_v4, %v1021_v22 }
 0x316   : > { %v859_v31 = vpop.f32.mrb[6].mxu0 }
 0x317   : > { %v1149_v33 = vmax.f32 %v1133_v5, 0.0  ;;  %v1022_v53 = vmul.f32 %v957_v44, %v859_v31  ;;  %v861_v32 = vpop.f32.mrb[7].mxu0  ;;  %v1094_v44 = vpop.permute.xlu0 %1093 }
 0x319   : > { %1165 = vst [vmem:[%s2267_s13 + $0x10] sm:$0xff] %v1149_v33  ;;  %v1134_v6 = vadd.f32 %v1069_v55, %v1022_v53 }
 0x31a   : > { %v864_v7 = vpop.f32.mrb[8].mxu0 }
 0x31b   : > { %v1150_v8 = vmax.f32 %v1134_v6, 0.0  ;;  %v1023_v9 = vmul.f32 %v962_v45, %v864_v7  ;;  %v866_v11 = vpop.f32.mrb[9].mxu0 }
 0x31d   : > { %1166 = vst [vmem:[%s2267_s13 + $0x18] sm:$0xff] %v1150_v8  ;;  %v1135_v13 = vadd.f32 %v1074_v12, %v1023_v9 }
 0x31e   : > { %v869_v14 = vpop.f32.mrb[10].mxu0 }
 0x31f   : > { %v1151_v15 = vmax.f32 %v1135_v13, 0.0  ;;  %v1024_v16 = vmul.f32 %v967_v46, %v869_v14  ;;  %v871_v17 = vpop.f32.mrb[11].mxu0 }
 0x321   : > { %1167 = vst [vmem:[%s2267_s13 + $0x20] sm:$0xff] %v1151_v15  ;;  %v1136_v19 = vadd.f32 %v1079_v18, %v1024_v16 }
 0x322   : > { %v874_v20 = vpop.f32.mrb[12].mxu0 }
 0x323   : > { %v1152_v21 = vmax.f32 %v1136_v19, 0.0  ;;  %v1025_v24 = vmul.f32 %v972_v47, %v874_v20  ;;  %v876_v25 = vpop.f32.mrb[13].mxu0 }
 0x325   : > { %1168 = vst [vmem:[%s2267_s13 + $0x28] sm:$0xff] %v1152_v21  ;;  %v1137_v27 = vadd.f32 %v1084_v26, %v1025_v24 }
 0x326   : > { %v879_v28 = vpop.f32.mrb[14].mxu0 }
 0x327   : > { %v1153_v29 = vmax.f32 %v1137_v27, 0.0  ;;  %v1026_v30 = vmul.f32 %v977_v48, %v879_v28  ;;  %v881_v34 = vpop.f32.mrb[15].mxu0  ;;  %v1099_v48 = vpop.permute.xlu1 %1098 }
 0x329   : > { %1169 = vst [vmem:[%s2267_s13 + $0x30] sm:$0xff] %v1153_v29  ;;  %v1138_v37 = vadd.f32 %v1089_v35, %v1026_v30 }
 0x32a   : > { %v884_v39 = vpop.f32.mrb[16].mxu0 }
 0x32b   : > { %v1154_v40 = vmax.f32 %v1138_v37, 0.0  ;;  %v1027_v42 = vmul.f32 %v2250_v49, %v884_v39  ;;  %v886_v43 = vpop.f32.mrb[17].mxu0  ;;  %v1104_v49 = vpop.permute.xlu0 %1103 }
 0x32d   : > { %1170 = vst [vmem:[%s2267_s13 + $0x38] sm:$0xff] %v1154_v40  ;;  %v1139_v45 = vadd.f32 %v1094_v44, %v1027_v42 }
 0x32e   : > { %v889_v46 = vpop.f32.mrb[18].mxu0 }
 0x32f   : > { %v1155_v47 = vmax.f32 %v1139_v45, 0.0  ;;  %v1028_v56 = vmul.f32 %v2252_v50, %v889_v46  ;;  %v891_v57 = vpop.f32.mrb[19].mxu0  ;;  %v1109_v50 = vpop.permute.xlu1 %1108 }
 0x331   : > { %1171 = vst [vmem:[%s2267_s13 + $0x40] sm:$0xff] %v1155_v47  ;;  %v1140_v58 = vadd.f32 %v1099_v48, %v1028_v56 }
 0x332   : > { %v894_v59 = vpop.f32.mrb[20].mxu0 }
 0x333   : > { %v1156_v60 = vmax.f32 %v1140_v58, 0.0  ;;  %v1029_v61 = vmul.f32 %v2254_v51, %v894_v59  ;;  %v896_v62 = vpop.f32.mrb[21].mxu0  ;;  %v1114_v51 = vpop.permute.xlu0 %1113 }
 0x334   : > { %v1119_v55 = vpop.permute.xlu1 %1118 }
 0x335   : > { %1172 = vst [vmem:[%s2267_s13 + $0x48] sm:$0xff] %v1156_v60  ;;  %v1141_v10 = vadd.f32 %v1104_v49, %v1029_v61 }
 0x336   : > { %v899_v0 = vpop.f32.mrb[22].mxu0 }
 0x337   : > { %v1157_v63 = vmax.f32 %v1141_v10, 0.0  ;;  %v1030_v1 = vmul.f32 %v2256_v52, %v899_v0  ;;  %v901_v2 = vpop.f32.mrb[23].mxu0  ;;  %v1124_v11 = vpop.permute.xlu0 %1123 }
 0x338   : > { %v1129_v16 = vpop.permute.xlu1 %1128 }
 0x339   : > { %1173 = vst [vmem:[%s2267_s13 + $0x50] sm:$0xff] %v1157_v63  ;;  %v1142_v23 = vadd.f32 %v1109_v50, %v1030_v1 }
 0x33a   : > { %v904_v22 = vpop.f32.mrb[24].mxu0 }
 0x33b   : > { %v1158_v3 = vmax.f32 %v1142_v23, 0.0  ;;  %v1031_v4 = vmul.f32 %v2258_v54, %v904_v22  ;;  %v906_v5 = vpop.f32.mrb[25].mxu0 }
 0x33d   : > { %1174 = vst [vmem:[%s2267_s13 + $0x58] sm:$0xff] %v1158_v3  ;;  %v1143_v31 = vadd.f32 %v1114_v51, %v1031_v4 }
 0x33e   : > { %v909_v33 = vpop.f32.mrb[26].mxu0 }
 0x33f   : > { %v1159_v53 = vmax.f32 %v1143_v31, 0.0  ;;  %v1032_v32 = vmul.f32 %v2260_v36, %v909_v33  ;;  %v911_v52 = vpop.f32.mrb[27].mxu0 }
 0x341   : > { %1175 = vst [vmem:[%s2267_s13 + $0x60] sm:$0xff] %v1159_v53  ;;  %v1144_v6 = vadd.f32 %v1119_v55, %v1032_v32 }
 0x342   : > { %v914_v7 = vpop.f32.mrb[28].mxu0 }
 0x343   : > { %v1160_v8 = vmax.f32 %v1144_v6, 0.0  ;;  %v1033_v54 = vmul.f32 %v2262_v38, %v914_v7  ;;  %v916_v9 = vpop.f32.mrb[29].mxu0 }
 0x345   : > { %1176 = vst [vmem:[%s2267_s13 + $0x68] sm:$0xff] %v1160_v8  ;;  %v1145_v12 = vadd.f32 %v1124_v11, %v1033_v54 }
 0x346   : > { %v919_v13 = vpop.f32.mrb[30].mxu0 }
 0x347   : > { %v1161_v36 = vmax.f32 %v1145_v12, 0.0  ;;  %v1034_v14 = vmul.f32 %v2264_v41, %v919_v13  ;;  %v921_v15 = vpop.f32.mrb[31].mxu0 }
 0x349   : > { %1177 = vst [vmem:[%s2267_s13 + $0x70] sm:$0xff] %v1161_v36  ;;  %v1146_v17 = vadd.f32 %v1129_v16, %v1034_v14 }
 0x34b   : > { %v1162_v38 = vmax.f32 %v1146_v17, 0.0 }
 0x34d   : > { %1178 = vst [vmem:[%s2267_s13 + $0x78] sm:$0xff] %v1162_v38 }
 0x34e   : > { %1662 = shalt.err (!%p1659_p9)
}
 0x34f   : > { %s1663_s26 = scalar_lea.hbm %s2297_s16, 2048  ;;  %s1667_s11 = scalar_lea.hbm %s2349_s5, 4096 }
 0x350   : > { %p1664_p13 = scmp.ne.s32.totalorder %s2297_s16, %s1663_s26  ;;  %p1668_p6 = scmp.lt.u32.totalorder %s2297_s16, %s2349_s5 }
 0x351   : > { %p1669_p10 = scmp.lt.u32.totalorder %s1667_s11, %s1663_s26  ;;  %p1671_p0 = scmp.lt.u32.totalorder %s1663_s26, %s2297_s16 }
 0x352   : > { %p1665_p2 = pnand %p1664_p13, %p2362_p12 }
 0x353   : > { %p1670_p11 = por %p1669_p10, %p1668_p6 }
 0x354   : > { %p1666_p5 = pneg %p1665_p2 }
 0x355   : > { %p1672_p3 = por %p1671_p0, %p1670_p11 }
 0x357   : > { %p1673_p4 = pnand %p1672_p3, %p1666_p5 }
 0x359   : > { %1676 = shalt.err (!%p1673_p4)
}
 0x35a   : > { %s1723_s14 = smov 128   ;;  %s1724_s28 = smov 256  }
 0x35b   : > { %s1725_s15 = smov 8  }
 0x35c   : > { %1566 = dma.vmem_to_hbm [thread:$0]  (%p2362_p12), %s2299_s9, 2048, %s2297_s16, %s1180_s22, %s1723_s14, %s1724_s28, %s1725_s15  }
 0x35d PF: > { %s1207_s6 = sand.u32 1, %s1703_s18   ;;  %p2363_p7 = scmp.ne.s32.totalorder %s2355_s30, 0 }
 0x35e   : > { %s1208_s17 = scalar_lea.sflag [#allocation5], %s1207_s6 }
 0x35f   : > { %p1573_p8 = pnand %p1275_p1, %p2363_p7 }
 0x361   : > { %1698 = dma.done.wait (!%p1573_p8), %s1208_s17, 2048  }
 0x362   : > { %1700 = vsyncadd (!%p1573_p8), %s1208_s17, 4294965248  ;;  %p16_p9 = scmp.ge.s32.totalorder %s1781_s24, 4   ;;  %s2364_s18 = smov %s1707_s19 }
 0x363   : > { %s2365_s19 = smov %s1711_s20  ;;  %s2366_s20 = smov %s1793_s27 }
 0x364   : > { %s2367_s21 = smov %s1781_s24  ;;  %18 = sbr.rel (!%p16_p9) target bundleno = 4 (0x4), region = 126 }
 0x36b   :  { %1213 = vsyncpa [#allocation4], 1 }
 0x36c   :  { %1215 = vsyncpa [#allocation4 + $0x1], 1 }
 0x36d   :  { %1216 = vsyncpa [#allocation5], 1 }
 0x36e   :  { %1218 = vsyncpa [#allocation5 + $0x1], 1 }

// kernel: tpu_custom_call.1
= control target key start
LH: loop header
LB: loop body
LE: loop exit
PB: predicated region body
PF: predicated region fallthrough
CT: control target
= control target key end

     0   :  { %10 = vsyncpa [#allocation4], 0  ;;  %s2344_s0 = inlined_call_operand.vmem [shape: f32[4,8,16,128], index: 0, kind: input, shape index: {}]   ;;  %s2345_s1 = inlined_call_operand.hbm [shape: f32[128,128], index: 1, kind: input, shape index: {}]   ;;  %s2346_s2 = inlined_call_operand.vmem [shape: f32[128,192], index: 2, kind: input, shape index: {}]   ;;  %s2347_s3 = inlined_call_operand.vmem [shape: f32[128,1], index: 3, kind: input, shape index: {}]   ;;  %s2348_s4 = inlined_call_operand.vmem [shape: f32[128,1], index: 4, kind: input, shape index: {}]   ;;  %s2349_s5 = inlined_call_operand.hbm [shape: f32[16,16,128], index: 5, kind: output, shape index: {}]  }
   0x1   :  { %11 = vsyncpa [#allocation5], 0 }
   0x2   :  { %13 = vsyncpa [#allocation5 + $0x1], 0  ;;  %s1756_s18 = smov 0   ;;  %s1758_s19 = smov 0  }
   0x3   :  { %s1760_s20 = smov 0   ;;  %s1762_s21 = smov 0  }
   0x4 LB: > { %s1777_s22 = sadd.s32 4294967295, %s1715_s21   ;;  %s1272_s23 = sadd.s32 4294967294, %s1715_s21   ;;  %s1715_s21 = sphi %s1762_s21, %s2367_s21   ;;  %s1711_s20 = sphi %s1760_s20, %s2366_s20   ;;  %s1707_s19 = sphi %s1758_s19, %s2365_s19   ;;  %s1703_s18 = sphi %s1756_s18, %s2364_s18  }
   0x5   : > { %s1781_s24 = sadd.s32 1, %s1715_s21   ;;  %s26_s25 = sadd.s32 1, %s1711_s20 }
   0x6   : > { %s23_s26 = ssub.s32 %s1715_s21, %s1781_s24  ;;  %p33_p0 = scmp.ne.s32.totalorder %s1711_s20, %s1707_s19 }
   0x7   : > { %p24_p1 = scmp.eq.s32.totalorder %s23_s26, 0  ;;  %p34_p2 = scmp.eq.s32.totalorder %s1715_s21, 0 }
   0x8   : > { %p147_p3 = scmp.eq.s32.totalorder %s1777_s22, 1  ;;  %p152_p4 = scmp.ne.s32.totalorder %s1707_s19, %s1703_s18 }
   0x9   : > { %s1793_s27 = scalar_select %p24_p1, %s1711_s20, %s26_s25  }
   0xa   : > { %p1795_p5 = por %p34_p2, %p33_p0  ;;  %p1799_p6 = por %p147_p3, %p33_p0 }
   0xb   : > { %p153_p7 = scmp.eq.s32.totalorder %s1272_s23, 1  ;;  %p1273_p8 = scmp.ge.s32.totalorder %s1715_s21, 1 }
   0xc   : > { %s2353_s28 = scalar_select %p1795_p5, 1, 0 }
   0xd   : > { %s2354_s29 = scalar_select %p1799_p6, 1, 0 }
   0xe   : > { %p160_p9 = scmp.lt.s32.totalorder %s1715_s21, 3  ;;  %p1805_p10 = por %p153_p7, %p152_p4 }
   0xf   : > { %p2350_p11 = scmp.eq.s32.totalorder %s1777_s22, 0  ;;  %s1717_s7 = smov [#allocation3]  }
  0x10   : > { %s2355_s30 = scalar_select %p1805_p10, 1, 0 }
  0x11   : > { %p1810_p12 = pnand %p1273_p8, %p160_p9  ;;  %s172_s8 = sshll.u32 %s1717_s7, 4  ;;  %s173_s8 = int_to_ptr.vmem [resolvable:$true] %s172_s8 }
  0x12   : > { %s1621_s12 = scalar_lea.hbm %s2345_s1, 2048 }
  0x13   : > { %s2356_s6 = scalar_select %p1810_p12, 1, 0 }
  0x14   : > { %p1568_p13 = pneg %p1810_p12  ;;  %p1622_p1 = scmp.ne.s32.totalorder %s2345_s1, %s1621_s12 }
  0x15   : > { %p1628_p7 = scmp.lt.u32.totalorder %s1621_s12, %s2345_s1 }
  0x16   : > { %p1818_p0 = pnand %p2350_p11, %p1568_p13 }
  0x18   : > { %p1623_p2 = pneg %p1818_p0 }
  0x1a   : > { %p1624_p3 = pnand %p1623_p2, %p1622_p1 }
  0x1c   : > { %p1625_p4 = pneg %p1624_p3 }
  0x1e   : > { %p1630_p8 = pnand %p1628_p7, %p1625_p4 }
  0x20   : > { %1633 = shalt.err (!%p1630_p8)
}
  0x21   : > { %s1634_s17 = scalar_lea.vmem %s173_s8, 2048  ;;  %p1642_p10 = scmp.lt.s32.totalorder %s173_s8, %s173_s8 }
  0x22   : > { %p1635_p9 = scmp.ne.s32.totalorder %s173_s8, %s1634_s17  ;;  %p1643_p6 = scmp.lt.s32.totalorder %s1634_s17, %s1634_s17 }
  0x24   : > { %p1637_p13 = pnand %p1635_p9, %p1623_p2  ;;  %p1644_p12 = por %p1643_p6, %p1642_p10 }
  0x26   : > { %p1638_p11 = pneg %p1637_p13 }
  0x28   : > { %p1645_p5 = pnand %p1644_p12, %p1638_p11 }
  0x2a   : > { %1648 = shalt.err (!%p1645_p5)
}
  0x2b   : > { %s1718_s23 = smov 128   ;;  %s1719_s25 = smov 8  }
  0x2c   : > { %1571 = dma.hbm_to_vmem [thread:$0]  (!%p1818_p0), %s2345_s1, 2048, %s173_s8, [#allocation4], %s1718_s23, %s1718_s23, %s1719_s25  }
  0x2d   : > { %p1275_p1 = scmp.ge.s32.totalorder %s1715_s21, 2 }
  0x2e   : > { %p2358_p2 = scmp.ne.s32.totalorder (!%p1275_p1), %s2353_s28, 0 }
  0x2f   : > { %191 = sbr.rel (%p1275_p1) target bundleno = 74 (0x4a), region = 32 }
  0x36   : > { %194 = sbr.rel (!%p2358_p2) target bundleno = 74 (0x4a), region = 36  ;;  %s196_s10 = sand.u32 (%p2358_p2), 1, %s1711_s20  }
  0x37   : > { %s1277_s11 = sshll.u32 (%p2358_p2), %s1715_s21, 3  ;;  %s1276_s12 = sshll.u32 (%p2358_p2), %s196_s10, 8 }
  0x38   : > { %s1848_s9 = scalar_lea.vmem (%p2358_p2), %s2344_s0, %s1277_s11  ;;  %s1853_s28 = scalar_lea.vmem (%p2358_p2), [#allocation2], %s1276_s12 }
  0x39   : > { %v290_v0 = vld [vmem:[%s1848_s9] sm:$0xff] (%p2358_p2)  ;;  %v292_v1 = vld [vmem:[%s1848_s9 + $0x10] sm:$0xff] (%p2358_p2) }
  0x3a   : > { %v294_v2 = vld [vmem:[%s1848_s9 + $0x20] sm:$0xff] (%p2358_p2)  ;;  %291 = vst [vmem:[%s1853_s28] sm:$0xff] (%p2358_p2), %v290_v0  ;;  %293 = vst [vmem:[%s1853_s28 + $0x8] sm:$0xff] (%p2358_p2), %v292_v1  ;;  %v296_v3 = vld [vmem:[%s1848_s9 + $0x30] sm:$0xff] (%p2358_p2) }
  0x3b   : > { %295 = vst [vmem:[%s1853_s28 + $0x10] sm:$0xff] (%p2358_p2), %v294_v2  ;;  %v298_v4 = vld [vmem:[%s1848_s9 + $0x40] sm:$0xff] (%p2358_p2)  ;;  %v300_v5 = vld [vmem:[%s1848_s9 + $0x50] sm:$0xff] (%p2358_p2)  ;;  %297 = vst [vmem:[%s1853_s28 + $0x18] sm:$0xff] (%p2358_p2), %v296_v3 }
  0x3c   : > { %299 = vst [vmem:[%s1853_s28 + $0x20] sm:$0xff] (%p2358_p2), %v298_v4  ;;  %301 = vst [vmem:[%s1853_s28 + $0x28] sm:$0xff] (%p2358_p2), %v300_v5  ;;  %v302_v6 = vld [vmem:[%s1848_s9 + $0x60] sm:$0xff] (%p2358_p2)  ;;  %v304_v7 = vld [vmem:[%s1848_s9 + $0x70] sm:$0xff] (%p2358_p2) }
  0x3d   : > { %v306_v8 = vld [vmem:[%s1848_s9 + $0x80] sm:$0xff]  ;;  %303 = vst [vmem:[%s1853_s28 + $0x30] sm:$0xff] %v302_v6  ;;  %305 = vst [vmem:[%s1853_s28 + $0x38] sm:$0xff] %v304_v7  ;;  %v308_v9 = vld [vmem:[%s1848_s9 + $0x90] sm:$0xff] }
  0x3e   : > { %307 = vst [vmem:[%s1853_s28 + $0x40] sm:$0xff] %v306_v8  ;;  %v310_v10 = vld [vmem:[%s1848_s9 + $0xa0] sm:$0xff]  ;;  %v312_v11 = vld [vmem:[%s1848_s9 + $0xb0] sm:$0xff]  ;;  %309 = vst [vmem:[%s1853_s28 + $0x48] sm:$0xff] %v308_v9 }
  0x3f   : > { %311 = vst [vmem:[%s1853_s28 + $0x50] sm:$0xff] %v310_v10  ;;  %313 = vst [vmem:[%s1853_s28 + $0x58] sm:$0xff] %v312_v11  ;;  %v314_v12 = vld [vmem:[%s1848_s9 + $0xc0] sm:$0xff]  ;;  %v316_v13 = vld [vmem:[%s1848_s9 + $0xd0] sm:$0xff] }
  0x40   : > { %v318_v14 = vld [vmem:[%s1848_s9 + $0xe0] sm:$0xff]  ;;  %315 = vst [vmem:[%s1853_s28 + $0x60] sm:$0xff] %v314_v12  ;;  %317 = vst [vmem:[%s1853_s28 + $0x68] sm:$0xff] %v316_v13  ;;  %v320_v15 = vld [vmem:[%s1848_s9 + $0xf0] sm:$0xff] }
  0x41   : > { %319 = vst [vmem:[%s1853_s28 + $0x70] sm:$0xff] %v318_v14  ;;  %v322_v16 = vld [vmem:[%s1848_s9 + $0x100] sm:$0xff]  ;;  %v324_v17 = vld [vmem:[%s1848_s9 + $0x110] sm:$0xff]  ;;  %321 = vst [vmem:[%s1853_s28 + $0x78] sm:$0xff] %v320_v15 }
  0x42   : > { %323 = vst [vmem:[%s1853_s28 + $0x80] sm:$0xff] %v322_v16  ;;  %325 = vst [vmem:[%s1853_s28 + $0x88] sm:$0xff] %v324_v17  ;;  %v326_v18 = vld [vmem:[%s1848_s9 + $0x120] sm:$0xff]  ;;  %v328_v19 = vld [vmem:[%s1848_s9 + $0x130] sm:$0xff] }
  0x43   : > { %v330_v20 = vld [vmem:[%s1848_s9 + $0x140] sm:$0xff]  ;;  %327 = vst [vmem:[%s1853_s28 + $0x90] sm:$0xff] %v326_v18  ;;  %329 = vst [vmem:[%s1853_s28 + $0x98] sm:$0xff] %v328_v19  ;;  %v332_v21 = vld [vmem:[%s1848_s9 + $0x150] sm:$0xff] }
  0x44   : > { %331 = vst [vmem:[%s1853_s28 + $0xa0] sm:$0xff] %v330_v20  ;;  %v334_v22 = vld [vmem:[%s1848_s9 + $0x160] sm:$0xff]  ;;  %v336_v23 = vld [vmem:[%s1848_s9 + $0x170] sm:$0xff]  ;;  %333 = vst [vmem:[%s1853_s28 + $0xa8] sm:$0xff] %v332_v21 }
  0x45   : > { %335 = vst [vmem:[%s1853_s28 + $0xb0] sm:$0xff] %v334_v22  ;;  %337 = vst [vmem:[%s1853_s28 + $0xb8] sm:$0xff] %v336_v23  ;;  %v338_v24 = vld [vmem:[%s1848_s9 + $0x180] sm:$0xff]  ;;  %v340_v25 = vld [vmem:[%s1848_s9 + $0x190] sm:$0xff] }
  0x46   : > { %v342_v26 = vld [vmem:[%s1848_s9 + $0x1a0] sm:$0xff]  ;;  %339 = vst [vmem:[%s1853_s28 + $0xc0] sm:$0xff] %v338_v24  ;;  %341 = vst [vmem:[%s1853_s28 + $0xc8] sm:$0xff] %v340_v25  ;;  %v344_v27 = vld [vmem:[%s1848_s9 + $0x1b0] sm:$0xff] }
  0x47   : > { %343 = vst [vmem:[%s1853_s28 + $0xd0] sm:$0xff] %v342_v26  ;;  %v346_v28 = vld [vmem:[%s1848_s9 + $0x1c0] sm:$0xff]  ;;  %v348_v29 = vld [vmem:[%s1848_s9 + $0x1d0] sm:$0xff]  ;;  %345 = vst [vmem:[%s1853_s28 + $0xd8] sm:$0xff] %v344_v27 }
  0x48   : > { %347 = vst [vmem:[%s1853_s28 + $0xe0] sm:$0xff] %v346_v28  ;;  %349 = vst [vmem:[%s1853_s28 + $0xe8] sm:$0xff] %v348_v29  ;;  %v350_v30 = vld [vmem:[%s1848_s9 + $0x1e0] sm:$0xff]  ;;  %v352_v31 = vld [vmem:[%s1848_s9 + $0x1f0] sm:$0xff] }
  0x49   : > { %351 = vst [vmem:[%s1853_s28 + $0xf0] sm:$0xff] %v350_v30  ;;  %353 = vst [vmem:[%s1853_s28 + $0xf8] sm:$0xff] %v352_v31 }
  0x4a PF: > { %p2359_p5 = scmp.ne.s32.totalorder %s2356_s6, 0 }
  0x4b   : > { %s1919_s8 = sand.u32 (!%p2359_p5), 1, %s1707_s19   ;;  %p2360_p6 = scmp.eq.s32.totalorder (!%p2359_p5), %s1777_s22, 0 }
  0x4c   : > { %362 = sbr.rel (%p2359_p5) target bundleno = 861 (0x35d), region = 74  ;;  %s1279_s15 = sshll.u32 (!%p2359_p5), %s1919_s8, 8 }
  0x4d   : > { %s1922_s16 = scalar_lea.vmem (!%p2359_p5), [#allocation2], %s1279_s15 }
  0x53   : > { %1694 = dma.done.wait (%p2360_p6), [#allocation4], 2048   ;;  %p2361_p10 = pmov %p2360_p6 }
  0x54   : > { %v1720_v32 = vmov 0.0|0.0   ;;  %v455_v33 = vld [vmem:[#allocation3] sm:$0xff]  ;;  %v456_v34 = vld [vmem:[#allocation3 + $0x8] sm:$0xff]  ;;  %v457_v35 = vld [vmem:[#allocation3 + $0x10] sm:$0xff]  ;;  %vm729_vm0 = vcmask 523264   ;;  %s1281_s12 = sshll.u32 %s1919_s8, 7 }
  0x55   : > { %1696 = vsyncadd (%p2361_p10), [#allocation4], 4294965248  ;;  %1526 = vmatprep.subr.bf16.mxu0 %v1720_v32  ;;  %v1929_v36 = vpack.c.bf16 %v456_v34, %v455_v33  ;;  %v458_v37 = vld [vmem:[#allocation3 + $0x18] sm:$0xff]  ;;  %v459_v39 = vld [vmem:[#allocation3 + $0x20] sm:$0xff]  ;;  %s2267_s13 = scalar_lea.vmem [#allocation6], %s1281_s12  ;;  %s1323_s14 = sshll.u32 %s1777_s22, 7 }
  0x56   : > { %v1931_v38 = vpack.c.bf16 %v458_v37, %v457_v35  ;;  %v460_v40 = vld [vmem:[#allocation3 + $0x28] sm:$0xff]  ;;  %v461_v42 = vld [vmem:[#allocation3 + $0x30] sm:$0xff]  ;;  %v396_v43 = vld [vmem:[%s1922_s16] sm:$0xff]  ;;  %s1192_s9 = sshll.u32 %s2267_s13, 4  ;;  %s1180_s22 = scalar_lea.sflag [#allocation5], %s1919_s8  ;;  %s2299_s9 = int_to_ptr.vmem [resolvable:$true] %s1192_s9 }
  0x57   : > { %1463 = vmatprep.subr.bf16.mxu1 %v1929_v36  ;;  %v1936_v41 = vpack.c.bf16 %v460_v40, %v459_v39  ;;  %v1282_v44 = vld [vmem:[%s1922_s16 + $0x40] sm:$0xff]  ;;  %v462_v45 = vld [vmem:[#allocation3 + $0x38] sm:$0xff]  ;;  %v397_v48 = vld [vmem:[%s1922_s16 + $0x8] sm:$0xff]  ;;  %s1649_s6 = scalar_lea.vmem %s2299_s9, 2048  ;;  %p2362_p12 = scmp.ne.s32.totalorder %s2354_s29, 0 }
  0x58   : > { %1465 = vmatpush3.bf16.msra.mxu1 %v1929_v36  ;;  %v413_v46 = vmax.f32 %v396_v43, %v1282_v44  ;;  %v1290_v47 = vld [vmem:[%s1922_s16 + $0x80] sm:$0xff]  ;;  %v1283_v50 = vld [vmem:[%s1922_s16 + $0x48] sm:$0xff]  ;;  %v398_v56 = vld [vmem:[%s1922_s16 + $0x10] sm:$0xff]  ;;  %v1950_v59 = vpack.c.bf16 %v462_v45, %v461_v42  ;;  %p1650_p11 = scmp.ne.s32.totalorder %s2299_s9, %s1649_s6  ;;  %s1722_s17 = smov [#allocation6]  }
  0x59   : > { %1467 = vmatprep.subr.bf16.mxu1 %v1931_v38  ;;  %v1298_v49 = vld [vmem:[%s1922_s16 + $0xc0] sm:$0xff]  ;;  %v1291_v51 = vld [vmem:[%s1922_s16 + $0x88] sm:$0xff]  ;;  %v414_v55 = vmax.f32 %v397_v48, %v1283_v50  ;;  %v1284_v57 = vld [vmem:[%s1922_s16 + $0x50] sm:$0xff]  ;;  %s1653_s23 = sshll.u32 %s1722_s17, 4  ;;  %s1654_s23 = int_to_ptr.vmem [resolvable:$false] %s1653_s23 }
  0x5a   : > { %v463_v52 = vld [vmem:[#allocation3 + $0x40] sm:$0xff]  ;;  %v464_v53 = vld [vmem:[#allocation3 + $0x48] sm:$0xff]  ;;  %v430_v54 = vmax.f32 %v413_v46, %v1290_v47  ;;  %v1292_v58 = vld [vmem:[%s1922_s16 + $0x90] sm:$0xff]  ;;  %v415_v61 = vmax.f32 %v398_v56, %v1284_v57  ;;  %p1651_p0 = pnand %p1650_p11, %p2362_p12  ;;  %s1655_s25 = scalar_lea.vmem %s1654_s23, 4096 }
  0x5b   : > { %v1299_v60 = vld [vmem:[%s1922_s16 + $0xc8] sm:$0xff]  ;;  %v399_v62 = vld [vmem:[%s1922_s16 + $0x18] sm:$0xff]  ;;  %v431_v1 = vmax.f32 %v414_v55, %v1291_v51  ;;  %v1300_v2 = vld [vmem:[%s1922_s16 + $0xd0] sm:$0xff]  ;;  %v1971_v16 = vpack.c.bf16 %v464_v53, %v463_v52  ;;  %p1656_p4 = scmp.lt.s32.totalorder %s2299_s9, %s1654_s23  ;;  %p1657_p7 = scmp.lt.s32.totalorder %s1655_s25, %s1649_s6 }
  0x5c   : > { %1469 = vmatpush3.bf16.msra.mxu1 %v1931_v38  ;;  %v1285_v63 = vld [vmem:[%s1922_s16 + $0x58] sm:$0xff]  ;;  %v1955_v0 = vmax.f32 %v430_v54, %v1298_v49  ;;  %v400_v5 = vld [vmem:[%s1922_s16 + $0x20] sm:$0xff]  ;;  %v432_v6 = vmax.f32 %v415_v61, %v1292_v58  ;;  %v401_v13 = vld [vmem:[%s1922_s16 + $0x28] sm:$0xff]  ;;  %p1652_p3 = pneg %p1651_p0 }
  0x5d   : > { %1471 = vmatprep.subr.bf16.mxu1 %v1936_v41  ;;  %v416_v3 = vmax.f32 %v399_v62, %v1285_v63  ;;  %v1293_v4 = vld [vmem:[%s1922_s16 + $0x98] sm:$0xff]  ;;  %v1286_v8 = vld [vmem:[%s1922_s16 + $0x60] sm:$0xff]  ;;  %v1965_v10 = vmax.f32 %v431_v1, %v1299_v60  ;;  %v1287_v14 = vld [vmem:[%s1922_s16 + $0x68] sm:$0xff]  ;;  %p1658_p8 = por %p1657_p7, %p1656_p4 }
  0x5e   : > { %v1301_v7 = vld [vmem:[%s1922_s16 + $0xd8] sm:$0xff]  ;;  %v1294_v9 = vld [vmem:[%s1922_s16 + $0xa0] sm:$0xff]  ;;  %1406 = vmatprep.mubr.f32.mxu1 %v1955_v0  ;;  %v417_v12 = vmax.f32 %v400_v5, %v1286_v8  ;;  %v1295_v15 = vld [vmem:[%s1922_s16 + $0xa8] sm:$0xff]  ;;  %v418_v17 = vmax.f32 %v401_v13, %v1287_v14  ;;  %v1975_v22 = vmax.f32 %v432_v6, %v1300_v2  ;;  %v1721_v6 = vmov 0  }
  0x5f   : > { %v433_v11 = vmax.f32 %v416_v3, %v1293_v4  ;;  %v465_v18 = vld [vmem:[#allocation3 + $0x50] sm:$0xff]  ;;  %v466_v19 = vld [vmem:[#allocation3 + $0x58] sm:$0xff]  ;;  %v1527_v21 = vpack.c.bf16 %v1965_v10, %v1955_v0  ;;  %v1302_v24 = vld [vmem:[%s1922_s16 + $0xe0] sm:$0xff]  ;;  %1620 = vset.pattern.permute.xlu1 %v1721_v6  ;;  %1619 = vset.pattern.permute.xlu0 %v1721_v6  ;;  %p1659_p9 = pnand %p1658_p8, %p1652_p3 }
  0x60   : > { %1473 = vmatpush3.bf16.msra.mxu1 %v1936_v41  ;;  %v434_v20 = vmax.f32 %v417_v12, %v1294_v9  ;;  %v435_v25 = vmax.f32 %v418_v17, %v1295_v15  ;;  %v1303_v26 = vld [vmem:[%s1922_s16 + $0xe8] sm:$0xff]  ;;  %v1482_v27 = vpack.c.bf16 %v466_v19, %v465_v18  ;;  %v467_v29 = vld [vmem:[#allocation3 + $0x60] sm:$0xff]  ;;  %v469_v37 = vld [vmem:[#allocation3 + $0x70] sm:$0xff] }
  0x61   : > { %1475 = vmatprep.subr.bf16.mxu1 %v1950_v59  ;;  %v1977_v23 = vmax.f32 %v433_v11, %v1301_v7  ;;  %1528 = vmatpush1.bf16.msra.mxu0 %v1527_v21  ;;  %v468_v30 = vld [vmem:[#allocation3 + $0x68] sm:$0xff]  ;;  %v470_v39 = vld [vmem:[#allocation3 + $0x78] sm:$0xff]  ;;  %v402_v42 = vld [vmem:[%s1922_s16 + $0x30] sm:$0xff] }
  0x62   : > { %1529 = vmatprep.subr.bf16.mxu0 %v1720_v32  ;;  %v1986_v31 = vmax.f32 %v434_v20, %v1302_v24  ;;  %v1988_v33 = vmax.f32 %v435_v25, %v1303_v26  ;;  %v1486_v35 = vpack.c.bf16 %v468_v30, %v467_v29  ;;  %v1490_v40 = vpack.c.bf16 %v470_v39, %v469_v37  ;;  %v1288_v43 = vld [vmem:[%s1922_s16 + $0x70] sm:$0xff]  ;;  %v403_v45 = vld [vmem:[%s1922_s16 + $0x38] sm:$0xff]  ;;  %v698_v3 = vld [vmem:[%s2346_s2 + $0x8] sm:$0xff] }
  0x63   : > { %v1530_v28 = vpack.c.bf16 %v1977_v23, %v1975_v22  ;;  %v419_v44 = vmax.f32 %v402_v42, %v1288_v43  ;;  %v1289_v46 = vld [vmem:[%s1922_s16 + $0x78] sm:$0xff]  ;;  %v1296_v47 = vld [vmem:[%s1922_s16 + $0xb0] sm:$0xff]  ;;  %1306 = vmatprep.mubr.msk.f32.mxu0 %vm729_vm0, %v698_v3  ;;  %v923_v5 = vld [vmem:[%s2347_s3] sm:$0xff] }
  0x64   : > { %1477 = vmatpush3.bf16.msra.mxu1 %v1950_v59  ;;  %v1533_v34 = vpack.c.bf16 %v1988_v33, %v1986_v31  ;;  %v420_v48 = vmax.f32 %v403_v45, %v1289_v46  ;;  %v1297_v50 = vld [vmem:[%s1922_s16 + $0xb8] sm:$0xff]  ;;  %v1304_v51 = vld [vmem:[%s1922_s16 + $0xf0] sm:$0xff]  ;;  %941 = vperm.xlu0 %1619, %v923_v5   ;;  %v924_v8 = vld [vmem:[%s2347_s3 + $0x8] sm:$0xff] }
  0x65   : > { %1479 = vmatprep.subr.bf16.mxu1 %v1971_v16  ;;  %1531 = vmatpush1.bf16.msra.mxu0 %v1530_v28  ;;  %v436_v49 = vmax.f32 %v419_v44, %v1296_v47  ;;  %v1305_v54 = vld [vmem:[%s1922_s16 + $0xf8] sm:$0xff]  ;;  %v925_v4 = vld [vmem:[%s2347_s3 + $0x10] sm:$0xff]  ;;  %v928_v9 = vld [vmem:[%s2347_s3 + $0x28] sm:$0xff]  ;;  %s2297_s16 = scalar_lea.hbm %s2349_s5, %s1323_s14 }
  0x66   : > { %1532 = vmatprep.subr.bf16.mxu0 %v1720_v32  ;;  %v437_v52 = vmax.f32 %v420_v48, %v1297_v50  ;;  %951 = vperm.xlu1 %1620, %v925_v4   ;;  %v926_v7 = vld [vmem:[%s2347_s3 + $0x18] sm:$0xff]  ;;  %v927_v11 = vld [vmem:[%s2347_s3 + $0x20] sm:$0xff]  ;;  %v929_v13 = vld [vmem:[%s2347_s3 + $0x30] sm:$0xff] }
  0x67   : > { %v2009_v53 = vmax.f32 %v436_v49, %v1304_v51  ;;  %v930_v12 = vld [vmem:[%s2347_s3 + $0x38] sm:$0xff]  ;;  %v932_v14 = vld [vmem:[%s2347_s3 + $0x48] sm:$0xff]  ;;  %v931_v15 = vld [vmem:[%s2347_s3 + $0x40] sm:$0xff] }
  0x68   : > { %1481 = vmatpush3.bf16.msra.mxu1 %v1971_v16  ;;  %v2015_v55 = vmax.f32 %v437_v52, %v1305_v54  ;;  %946 = vperm.xlu0 %1619, %v924_v8   ;;  %v933_v17 = vld [vmem:[%s2347_s3 + $0x50] sm:$0xff]  ;;  %v936_v18 = vld [vmem:[%s2347_s3 + $0x68] sm:$0xff]  ;;  %v935_v19 = vld [vmem:[%s2347_s3 + $0x60] sm:$0xff] }
  0x69   : > { %1483 = vmatprep.subr.bf16.mxu1 %v1482_v27  ;;  %1534 = vmatpush1.bf16.msra.mxu0 %v1533_v34  ;;  %v938_v20 = vld [vmem:[%s2347_s3 + $0x78] sm:$0xff]  ;;  %v937_v21 = vld [vmem:[%s2347_s3 + $0x70] sm:$0xff]  ;;  %v1036_v24 = vld [vmem:[%s2348_s4 + $0x8] sm:$0xff] }
  0x6a   : > { %1535 = vmatprep.subr.bf16.mxu0 %v1720_v32  ;;  %956 = vperm.xlu1 %1620, %v926_v7   ;;  %v1035_v25 = vld [vmem:[%s2348_s4] sm:$0xff]  ;;  %v1038_v26 = vld [vmem:[%s2348_s4 + $0x18] sm:$0xff]  ;;  %v1040_v28 = vld [vmem:[%s2348_s4 + $0x28] sm:$0xff] }
  0x6b   : > { %v1039_v29 = vld [vmem:[%s2348_s4 + $0x20] sm:$0xff]  ;;  %v1042_v30 = vld [vmem:[%s2348_s4 + $0x38] sm:$0xff]  ;;  %v1041_v34 = vld [vmem:[%s2348_s4 + $0x30] sm:$0xff] }
  0x6c   : > { %1485 = vmatpush3.bf16.msra.mxu1 %v1482_v27  ;;  %961 = vperm.xlu0 %1619, %v927_v11   ;;  %v1043_v37 = vld [vmem:[%s2348_s4 + $0x40] sm:$0xff]  ;;  %v1046_v39 = vld [vmem:[%s2348_s4 + $0x58] sm:$0xff]  ;;  %v1048_v42 = vld [vmem:[%s2348_s4 + $0x68] sm:$0xff] }
  0x6d   : > { %1487 = vmatprep.subr.bf16.mxu1 %v1486_v35  ;;  %v1047_v43 = vld [vmem:[%s2348_s4 + $0x60] sm:$0xff]  ;;  %v1050_v44 = vld [vmem:[%s2348_s4 + $0x78] sm:$0xff]  ;;  %v1049_v45 = vld [vmem:[%s2348_s4 + $0x70] sm:$0xff] }
  0x6e   : > { %966 = vperm.xlu1 %1620, %v928_v9   ;;  %v704_v6 = vld [vmem:[%s2346_s2 + $0x38] sm:$0xff]  ;;  %v703_v7 = vld [vmem:[%s2346_s2 + $0x30] sm:$0xff]  ;;  %v706_v8 = vld [vmem:[%s2346_s2 + $0x48] sm:$0xff] }
  0x6f   : > { %v705_v9 = vld [vmem:[%s2346_s2 + $0x40] sm:$0xff]  ;;  %v708_v11 = vld [vmem:[%s2346_s2 + $0x58] sm:$0xff] }
  0x70   : > { %1489 = vmatpush3.bf16.msra.mxu1 %v1486_v35  ;;  %971 = vperm.xlu0 %1619, %v929_v13   ;;  %v710_v13 = vld [vmem:[%s2346_s2 + $0x68] sm:$0xff] }
  0x71   : > { %1491 = vmatprep.subr.bf16.mxu1 %v1490_v40 }
  0x72   : > { %976 = vperm.xlu1 %1620, %v930_v12   ;;  %v707_v12 = vld [vmem:[%s2346_s2 + $0x50] sm:$0xff] }
  0x74   : > { %1493 = vmatpush3.bf16.msra.mxu1 %v1490_v40  ;;  %981 = vperm.xlu0 %1619, %v931_v15   ;;  %v712_v15 = vld [vmem:[%s2346_s2 + $0x78] sm:$0xff] }
  0x75   : > { %1495 = vmatprep.subr.bf16.mxu1 %v1929_v36 }
  0x76   : > { %986 = vperm.xlu1 %1620, %v932_v14   ;;  %v709_v14 = vld [vmem:[%s2346_s2 + $0x60] sm:$0xff] }
  0x77   : > { %1407 = vmatmul.mubr.f32.vlgmr.msra.gmra.mrb[0].mxu1 %v1965_v10 }
  0x78   : > { %1409 = vmatprep.mubr.f32.mxu1 %v1975_v22  ;;  %1497 = vmatpush3.bf16.msra.mxu1 %v1929_v36  ;;  %v1536_v36 = vpack.c.bf16 %v2015_v55, %v2009_v53 }
  0x79   : > { %1499 = vmatprep.subr.bf16.mxu1 %v1931_v38  ;;  %991 = vperm.xlu0 %1619, %v933_v17   ;;  %v714_v17 = vld [vmem:[%s2346_s2 + $0x88] sm:$0xff] }
  0x7a   : > { %1537 = vmatpush1.bf16.msra.mxu0 %v1536_v36 }
  0x7b   : > { %1410 = vmatmul.mubr.f32.gmra.mrb[2].mxu1 %v1977_v23  ;;  %1538 = vmatprep.subr.bf16.mxu0 %v1720_v32 }
  0x7c   : > { %1412 = vmatprep.mubr.f32.mxu1 %v1986_v31  ;;  %1501 = vmatpush3.bf16.msra.mxu1 %v1931_v38 }
  0x7d   : > { %1503 = vmatprep.subr.bf16.mxu1 %v1936_v41  ;;  %1001 = vperm.xlu0 %1619, %v935_v19   ;;  %v716_v19 = vld [vmem:[%s2346_s2 + $0x98] sm:$0xff] }
  0x7f   : > { %1413 = vmatmul.mubr.f32.gmra.mrb[4].mxu1 %v1988_v33 }
  0x80   : > { %1415 = vmatprep.mubr.f32.mxu1 %v2009_v53  ;;  %1505 = vmatpush3.bf16.msra.mxu1 %v1936_v41 }
  0x81   : > { %1507 = vmatprep.subr.bf16.mxu1 %v1950_v59  ;;  %1011 = vperm.xlu0 %1619, %v937_v21   ;;  %v718_v21 = vld [vmem:[%s2346_s2 + $0xa8] sm:$0xff] }
  0x83   : > { %1416 = vmatmul.mubr.f32.gmra.mrb[6].mxu1 %v2015_v55 }
  0x84   : > { %1509 = vmatpush3.bf16.msra.mxu1 %v1950_v59 }
  0x85   : > { %1511 = vmatprep.subr.bf16.mxu1 %v1971_v16  ;;  %1053 = vperm.xlu0 %1619, %v1035_v25   ;;  %v720_v25 = vld [vmem:[%s2346_s2 + $0xb8] sm:$0xff] }
  0x88   : > { %1513 = vmatpush3.bf16.msra.mxu1 %v1971_v16  ;;  %v934_v16 = vld [vmem:[%s2347_s3 + $0x58] sm:$0xff] }
  0x89   : > { %1515 = vmatprep.subr.bf16.mxu1 %v1482_v27  ;;  %996 = vperm.xlu1 %1620, %v934_v16   ;;  %v711_v16 = vld [vmem:[%s2346_s2 + $0x70] sm:$0xff] }
  0x8c   : > { %1517 = vmatpush3.bf16.msra.mxu1 %v1482_v27  ;;  %v1037_v27 = vld [vmem:[%s2348_s4 + $0x10] sm:$0xff] }
  0x8d   : > { %1519 = vmatprep.subr.bf16.mxu1 %v1486_v35  ;;  %1006 = vperm.xlu1 %1620, %v936_v18   ;;  %v713_v18 = vld [vmem:[%s2346_s2 + $0x80] sm:$0xff] }
  0x8e   : > { %1063 = vperm.xlu0 %1619, %v1037_v27   ;;  %v722_v27 = vld [vmem:[%s2346_s2 + $0xc8] sm:$0xff] }
  0x90   : > { %1521 = vmatpush3.bf16.msra.mxu1 %v1486_v35  ;;  %v1044_v35 = vld [vmem:[%s2348_s4 + $0x48] sm:$0xff] }
  0x91   : > { %1523 = vmatprep.subr.bf16.mxu1 %v1490_v40  ;;  %1016 = vperm.xlu1 %1620, %v938_v20   ;;  %v715_v20 = vld [vmem:[%s2346_s2 + $0x90] sm:$0xff] }
  0x92   : > { %1073 = vperm.xlu0 %1619, %v1039_v29   ;;  %v724_v29 = vld [vmem:[%s2346_s2 + $0xd8] sm:$0xff] }
  0x94   : > { %1525 = vmatpush3.bf16.msra.mxu1 %v1490_v40  ;;  %v1045_v40 = vld [vmem:[%s2348_s4 + $0x50] sm:$0xff] }
  0x95   : > { %1058 = vperm.xlu1 %1620, %v1036_v24   ;;  %v717_v24 = vld [vmem:[%s2346_s2 + $0xa0] sm:$0xff] }
  0x96   : > { %1083 = vperm.xlu0 %1619, %v1041_v34   ;;  %v726_v34 = vld [vmem:[%s2346_s2 + $0xe8] sm:$0xff] }
  0x99   : > { %1068 = vperm.xlu1 %1620, %v1038_v26   ;;  %v719_v26 = vld [vmem:[%s2346_s2 + $0xb0] sm:$0xff] }
  0x9a   : > { %1093 = vperm.xlu0 %1619, %v1043_v37   ;;  %v728_v37 = vld [vmem:[%s2346_s2 + $0xf8] sm:$0xff] }
  0x9d   : > { %1078 = vperm.xlu1 %1620, %v1040_v28   ;;  %v721_v28 = vld [vmem:[%s2346_s2 + $0xc0] sm:$0xff] }
  0x9e   : > { %1103 = vperm.xlu0 %1619, %v1045_v40  }
  0xa1   : > { %1088 = vperm.xlu1 %1620, %v1042_v30   ;;  %v723_v30 = vld [vmem:[%s2346_s2 + $0xd0] sm:$0xff] }
  0xa2   : > { %1113 = vperm.xlu0 %1619, %v1047_v43  }
  0xa5   : > { %1098 = vperm.xlu1 %1620, %v1044_v35   ;;  %v725_v35 = vld [vmem:[%s2346_s2 + $0xe0] sm:$0xff] }
  0xa6   : > { %1123 = vperm.xlu0 %1619, %v1049_v45  }
  0xa9   : > { %1108 = vperm.xlu1 %1620, %v1046_v39   ;;  %v727_v39 = vld [vmem:[%s2346_s2 + $0xf0] sm:$0xff] }
  0xad   : > { %1118 = vperm.xlu1 %1620, %v1048_v42  }
  0xb1   : > { %1128 = vperm.xlu1 %1620, %v1050_v44  }
  0xe3   : > { %v942_v40 = vpop.permute.xlu0 %941 }
  0xe5   : > { %v952_v42 = vpop.permute.xlu1 %951 }
  0xe7   : > { %v947_v43 = vpop.permute.xlu0 %946 }
  0xe9   : > { %v957_v44 = vpop.permute.xlu1 %956 }
  0xeb   : > { %v962_v45 = vpop.permute.xlu0 %961 }
 0x14a   : > { %v1408_v38 = vpop.f32.mrb[0].mxu1 }
 0x14b   : > { %v537_v41 = vpop.f32.mrb[1].mxu1 }
 0x14c   : > { %v1539_v56 = vpack.c.bf16 %v1408_v38, %v537_v41  ;;  %1450 = vmatprep.mubr.f32.mxu1 %v537_v41 }
 0x14d   : > { %1451 = vmatmul.mubr.f32.vlgmr.msra.gmra.mrb[8].mxu1 %v1408_v38 }
 0x14e   : > { %v1411_v57 = vpop.f32.mrb[2].mxu1  ;;  %1540 = vmatpush1.bf16.msra.mxu0 %v1539_v56 }
 0x14f   : > { %v547_v58 = vpop.f32.mrb[3].mxu1  ;;  %1541 = vmatprep.subr.bf16.mxu0 %v1720_v32 }
 0x150   : > { %v1542_v59 = vpack.c.bf16 %v1411_v57, %v547_v58  ;;  %1453 = vmatprep.mubr.f32.mxu1 %v547_v58 }
 0x151   : > { %1454 = vmatmul.mubr.f32.gmra.mrb[10].mxu1 %v1411_v57 }
 0x152   : > { %v1414_v60 = vpop.f32.mrb[4].mxu1  ;;  %1543 = vmatpush1.bf16.msra.mxu0 %v1542_v59 }
 0x153   : > { %v557_v61 = vpop.f32.mrb[5].mxu1  ;;  %1544 = vmatprep.subr.bf16.mxu0 %v1720_v32 }
 0x154   : > { %v1545_v62 = vpack.c.bf16 %v1414_v60, %v557_v61  ;;  %1456 = vmatprep.mubr.f32.mxu1 %v557_v61 }
 0x155   : > { %1457 = vmatmul.mubr.f32.gmra.mrb[12].mxu1 %v1414_v60 }
 0x156   : > { %v1417_v63 = vpop.f32.mrb[6].mxu1  ;;  %1546 = vmatpush1.bf16.msra.mxu0 %v1545_v62 }
 0x157   : > { %v567_v1 = vpop.f32.mrb[7].mxu1  ;;  %1547 = vmatprep.subr.bf16.mxu0 %v1720_v32 }
 0x158   : > { %v1548_v2 = vpack.c.bf16 %v1417_v63, %v567_v1  ;;  %1459 = vmatprep.mubr.f32.mxu1 %v567_v1 }
 0x159   : > { %1460 = vmatmul.mubr.f32.gmra.mrb[14].mxu1 %v1417_v63 }
 0x15a   : > { %1549 = vmatpush1.bf16.msra.mxu0 %v1548_v2 }
 0x15b   : > { %1550 = vmatprep.subr.bf16.mxu0 %v1720_v32 }
 0x220   : > { %v1452_v46 = vpop.f32.mrb[8].mxu1 }
 0x221   : > { %v682_v47 = vmul.f32 2.0, %v1452_v46  ;;  %v642_v48 = vpop.f32.mrb[9].mxu1  ;;  %v967_v46 = vpop.permute.xlu1 %966 }
 0x222   : > { %v681_v49 = vmul.f32 2.0, %v642_v48 }
 0x223   : > { %v690_v50 = vsub.f32 %v682_v47, %v1965_v10  ;;  %v972_v47 = vpop.permute.xlu0 %971 }
 0x224   : > { %v689_v51 = vsub.f32 %v681_v49, %v1955_v0  ;;  %v1455_v52 = vpop.f32.mrb[10].mxu1 }
 0x225   : > { %v684_v54 = vmul.f32 2.0, %v1455_v52  ;;  %v652_v36 = vpop.f32.mrb[11].mxu1  ;;  %v977_v48 = vpop.permute.xlu1 %976 }
 0x226   : > { %v683_v38 = vmul.f32 2.0, %v652_v36  ;;  %v1551_v41 = vpack.c.bf16 %v690_v50, %v689_v51 }
 0x227   : > { %v692_v56 = vsub.f32 %v684_v54, %v1977_v23  ;;  %v2250_v49 = vpop.permute.xlu0 %981 }
 0x228   : > { %v691_v57 = vsub.f32 %v683_v38, %v1975_v22  ;;  %v1458_v58 = vpop.f32.mrb[12].mxu1  ;;  %1552 = vmatpush1.bf16.msra.mxu0 %v1551_v41 }
 0x229   : > { %v686_v59 = vmul.f32 2.0, %v1458_v58  ;;  %v662_v60 = vpop.f32.mrb[13].mxu1  ;;  %1553 = vmatprep.subr.bf16.mxu0 %v1720_v32  ;;  %v2252_v50 = vpop.permute.xlu1 %986 }
 0x22a   : > { %v685_v61 = vmul.f32 2.0, %v662_v60  ;;  %v1554_v62 = vpack.c.bf16 %v692_v56, %v691_v57 }
 0x22b   : > { %v694_v10 = vsub.f32 %v686_v59, %v1988_v33  ;;  %v700_v33 = vld [vmem:[%s2346_s2 + $0x18] sm:$0xff]  ;;  %v2254_v51 = vpop.permute.xlu0 %991 }
 0x22c   : > { %v693_v0 = vsub.f32 %v685_v61, %v1986_v31  ;;  %v1461_v63 = vpop.f32.mrb[14].mxu1  ;;  %1555 = vmatpush1.bf16.msra.mxu0 %v1554_v62  ;;  %v697_v31 = vld [vmem:[%s2346_s2] sm:$0xff] }
 0x22d   : > { %v688_v1 = vmul.f32 2.0, %v1461_v63  ;;  %v672_v2 = vpop.f32.mrb[15].mxu1  ;;  %1556 = vmatprep.subr.bf16.mxu0 %v1720_v32  ;;  %v2256_v52 = vpop.permute.xlu1 %996 }
 0x22e   : > { %v687_v23 = vmul.f32 2.0, %v672_v2  ;;  %v1557_v22 = vpack.c.bf16 %v694_v10, %v693_v0 }
 0x22f   : > { %v696_v3 = vsub.f32 %v688_v1, %v2015_v55  ;;  %v701_v55 = vld [vmem:[%s2346_s2 + $0x20] sm:$0xff]  ;;  %v2258_v54 = vpop.permute.xlu0 %1001 }
 0x230   : > { %v695_v4 = vsub.f32 %v687_v23, %v2009_v53  ;;  %1558 = vmatpush1.bf16.msra.mxu0 %v1557_v22  ;;  %v699_v53 = vld [vmem:[%s2346_s2 + $0x10] sm:$0xff] }
 0x231   : > { %1559 = vmatprep.subr.bf16.mxu0 %v1720_v32  ;;  %v702_v32 = vld [vmem:[%s2346_s2 + $0x28] sm:$0xff]  ;;  %v2260_v36 = vpop.permute.xlu1 %1006 }
 0x232   : > { %v1560_v5 = vpack.c.bf16 %v696_v3, %v695_v4 }
 0x233   : > { %v2262_v38 = vpop.permute.xlu0 %1011 }
 0x234   : > { %1561 = vmatpush1.bf16.msra.mxu0 %v1560_v5 }
 0x235   : > { %v2264_v41 = vpop.permute.xlu1 %1016 }
 0x237   : > { %843 = vmatmul.mubr.f32.vlgmr.msra.gmra.mrb[0].mxu0 %v697_v31  ;;  %v1054_v59 = vpop.permute.xlu0 %1053 }
 0x238   : > { %1307 = vmatprep.mubr.msk.f32.mxu0 %vm729_vm0, %v700_v33 }
 0x239   : > { %v1059_v63 = vpop.permute.xlu1 %1058 }
 0x23b   : > { %848 = vmatmul.mubr.f32.gmra.mrb[2].mxu0 %v699_v53  ;;  %v1064_v4 = vpop.permute.xlu0 %1063 }
 0x23c   : > { %1308 = vmatprep.mubr.msk.f32.mxu0 %vm729_vm0, %v702_v32 }
 0x23f   : > { %853 = vmatmul.mubr.f32.gmra.mrb[4].mxu0 %v701_v55  ;;  %v1069_v55 = vpop.permute.xlu1 %1068 }
 0x240   : > { %1309 = vmatprep.mubr.msk.f32.mxu0 %vm729_vm0, %v704_v6 }
 0x243   : > { %858 = vmatmul.mubr.f32.gmra.mrb[6].mxu0 %v703_v7 }
 0x244   : > { %1310 = vmatprep.mubr.msk.f32.mxu0 %vm729_vm0, %v706_v8 }
 0x247   : > { %863 = vmatmul.mubr.f32.gmra.mrb[8].mxu0 %v705_v9 }
 0x248   : > { %1311 = vmatprep.mubr.msk.f32.mxu0 %vm729_vm0, %v708_v11 }
 0x24b   : > { %868 = vmatmul.mubr.f32.gmra.mrb[10].mxu0 %v707_v12  ;;  %v1074_v12 = vpop.permute.xlu0 %1073 }
 0x24c   : > { %1312 = vmatprep.mubr.msk.f32.mxu0 %vm729_vm0, %v710_v13 }
 0x24f   : > { %873 = vmatmul.mubr.f32.gmra.mrb[12].mxu0 %v709_v14 }
 0x250   : > { %1313 = vmatprep.mubr.msk.f32.mxu0 %vm729_vm0, %v712_v15 }
 0x253   : > { %878 = vmatmul.mubr.f32.gmra.mrb[14].mxu0 %v711_v16 }
 0x254   : > { %1314 = vmatprep.mubr.msk.f32.mxu0 %vm729_vm0, %v714_v17 }
 0x257   : > { %883 = vmatmul.mubr.f32.gmra.mrb[16].mxu0 %v713_v18  ;;  %v1079_v18 = vpop.permute.xlu1 %1078 }
 0x258   : > { %1315 = vmatprep.mubr.msk.f32.mxu0 %vm729_vm0, %v716_v19 }
 0x25b   : > { %888 = vmatmul.mubr.f32.gmra.mrb[18].mxu0 %v715_v20 }
 0x25c   : > { %1316 = vmatprep.mubr.msk.f32.mxu0 %vm729_vm0, %v718_v21 }
 0x25f   : > { %893 = vmatmul.mubr.f32.gmra.mrb[20].mxu0 %v717_v24 }
 0x260   : > { %1317 = vmatprep.mubr.msk.f32.mxu0 %vm729_vm0, %v720_v25 }
 0x263   : > { %898 = vmatmul.mubr.f32.gmra.mrb[22].mxu0 %v719_v26  ;;  %v1084_v26 = vpop.permute.xlu0 %1083 }
 0x264   : > { %1318 = vmatprep.mubr.msk.f32.mxu0 %vm729_vm0, %v722_v27 }
 0x267   : > { %903 = vmatmul.mubr.f32.gmra.mrb[24].mxu0 %v721_v28 }
 0x268   : > { %1319 = vmatprep.mubr.msk.f32.mxu0 %vm729_vm0, %v724_v29 }
 0x26b   : > { %908 = vmatmul.mubr.f32.gmra.mrb[26].mxu0 %v723_v30 }
 0x26c   : > { %1320 = vmatprep.mubr.msk.f32.mxu0 %vm729_vm0, %v726_v34 }
 0x26f   : > { %913 = vmatmul.mubr.f32.gmra.mrb[28].mxu0 %v725_v35  ;;  %v1089_v35 = vpop.permute.xlu1 %1088 }
 0x270   : > { %1321 = vmatprep.mubr.msk.f32.mxu0 %vm729_vm0, %v728_v37 }
 0x273   : > { %918 = vmatmul.mubr.f32.gmra.mrb[30].mxu0 %v727_v39 }
 0x30a   : > { %v844_v56 = vpop.f32.mrb[0].mxu0 }
 0x30b   : > { %v1019_v57 = vmul.f32 %v942_v40, %v844_v56  ;;  %v846_v58 = vpop.f32.mrb[1].mxu0 }
 0x30d   : > { %v1131_v60 = vadd.f32 %v1054_v59, %v1019_v57 }
 0x30e   : > { %v849_v61 = vpop.f32.mrb[2].mxu0 }
 0x30f   : > { %v1147_v62 = vmax.f32 %v1131_v60, 0.0  ;;  %v1020_v10 = vmul.f32 %v947_v43, %v849_v61  ;;  %v851_v0 = vpop.f32.mrb[3].mxu0 }
 0x311   : > { %1163 = vst [vmem:[%s2267_s13] sm:$0xff] %v1147_v62  ;;  %v1132_v1 = vadd.f32 %v1059_v63, %v1020_v10 }
 0x312   : > { %v854_v2 = vpop.f32.mrb[4].mxu0 }
 0x313   : > { %v1148_v23 = vmax.f32 %v1132_v1, 0.0  ;;  %v1021_v22 = vmul.f32 %v952_v42, %v854_v2  ;;  %v856_v3 = vpop.f32.mrb[5].mxu0 }
 0x315   : > { %1164 = vst [vmem:[%s2267_s13 + $0x8] sm:$0xff] %v1148_v23  ;;  %v1133_v5 = vadd.f32 %v1064_v4, %v1021_v22 }
 0x316   : > { %v859_v31 = vpop.f32.mrb[6].mxu0 }
 0x317   : > { %v1149_v33 = vmax.f32 %v1133_v5, 0.0  ;;  %v1022_v53 = vmul.f32 %v957_v44, %v859_v31  ;;  %v861_v32 = vpop.f32.mrb[7].mxu0  ;;  %v1094_v44 = vpop.permute.xlu0 %1093 }
 0x319   : > { %1165 = vst [vmem:[%s2267_s13 + $0x10] sm:$0xff] %v1149_v33  ;;  %v1134_v6 = vadd.f32 %v1069_v55, %v1022_v53 }
 0x31a   : > { %v864_v7 = vpop.f32.mrb[8].mxu0 }
 0x31b   : > { %v1150_v8 = vmax.f32 %v1134_v6, 0.0  ;;  %v1023_v9 = vmul.f32 %v962_v45, %v864_v7  ;;  %v866_v11 = vpop.f32.mrb[9].mxu0 }
 0x31d   : > { %1166 = vst [vmem:[%s2267_s13 + $0x18] sm:$0xff] %v1150_v8  ;;  %v1135_v13 = vadd.f32 %v1074_v12, %v1023_v9 }
 0x31e   : > { %v869_v14 = vpop.f32.mrb[10].mxu0 }
 0x31f   : > { %v1151_v15 = vmax.f32 %v1135_v13, 0.0  ;;  %v1024_v16 = vmul.f32 %v967_v46, %v869_v14  ;;  %v871_v17 = vpop.f32.mrb[11].mxu0 }
 0x321   : > { %1167 = vst [vmem:[%s2267_s13 + $0x20] sm:$0xff] %v1151_v15  ;;  %v1136_v19 = vadd.f32 %v1079_v18, %v1024_v16 }
 0x322   : > { %v874_v20 = vpop.f32.mrb[12].mxu0 }
 0x323   : > { %v1152_v21 = vmax.f32 %v1136_v19, 0.0  ;;  %v1025_v24 = vmul.f32 %v972_v47, %v874_v20  ;;  %v876_v25 = vpop.f32.mrb[13].mxu0 }
 0x325   : > { %1168 = vst [vmem:[%s2267_s13 + $0x28] sm:$0xff] %v1152_v21  ;;  %v1137_v27 = vadd.f32 %v1084_v26, %v1025_v24 }
 0x326   : > { %v879_v28 = vpop.f32.mrb[14].mxu0 }
 0x327   : > { %v1153_v29 = vmax.f32 %v1137_v27, 0.0  ;;  %v1026_v30 = vmul.f32 %v977_v48, %v879_v28  ;;  %v881_v34 = vpop.f32.mrb[15].mxu0  ;;  %v1099_v48 = vpop.permute.xlu1 %1098 }
 0x329   : > { %1169 = vst [vmem:[%s2267_s13 + $0x30] sm:$0xff] %v1153_v29  ;;  %v1138_v37 = vadd.f32 %v1089_v35, %v1026_v30 }
 0x32a   : > { %v884_v39 = vpop.f32.mrb[16].mxu0 }
 0x32b   : > { %v1154_v40 = vmax.f32 %v1138_v37, 0.0  ;;  %v1027_v42 = vmul.f32 %v2250_v49, %v884_v39  ;;  %v886_v43 = vpop.f32.mrb[17].mxu0  ;;  %v1104_v49 = vpop.permute.xlu0 %1103 }
 0x32d   : > { %1170 = vst [vmem:[%s2267_s13 + $0x38] sm:$0xff] %v1154_v40  ;;  %v1139_v45 = vadd.f32 %v1094_v44, %v1027_v42 }
 0x32e   : > { %v889_v46 = vpop.f32.mrb[18].mxu0 }
 0x32f   : > { %v1155_v47 = vmax.f32 %v1139_v45, 0.0  ;;  %v1028_v56 = vmul.f32 %v2252_v50, %v889_v46  ;;  %v891_v57 = vpop.f32.mrb[19].mxu0  ;;  %v1109_v50 = vpop.permute.xlu1 %1108 }
 0x331   : > { %1171 = vst [vmem:[%s2267_s13 + $0x40] sm:$0xff] %v1155_v47  ;;  %v1140_v58 = vadd.f32 %v1099_v48, %v1028_v56 }
 0x332   : > { %v894_v59 = vpop.f32.mrb[20].mxu0 }
 0x333   : > { %v1156_v60 = vmax.f32 %v1140_v58, 0.0  ;;  %v1029_v61 = vmul.f32 %v2254_v51, %v894_v59  ;;  %v896_v62 = vpop.f32.mrb[21].mxu0  ;;  %v1114_v51 = vpop.permute.xlu0 %1113 }
 0x334   : > { %v1119_v55 = vpop.permute.xlu1 %1118 }
 0x335   : > { %1172 = vst [vmem:[%s2267_s13 + $0x48] sm:$0xff] %v1156_v60  ;;  %v1141_v10 = vadd.f32 %v1104_v49, %v1029_v61 }
 0x336   : > { %v899_v0 = vpop.f32.mrb[22].mxu0 }
 0x337   : > { %v1157_v63 = vmax.f32 %v1141_v10, 0.0  ;;  %v1030_v1 = vmul.f32 %v2256_v52, %v899_v0  ;;  %v901_v2 = vpop.f32.mrb[23].mxu0  ;;  %v1124_v11 = vpop.permute.xlu0 %1123 }
 0x338   : > { %v1129_v16 = vpop.permute.xlu1 %1128 }
 0x339   : > { %1173 = vst [vmem:[%s2267_s13 + $0x50] sm:$0xff] %v1157_v63  ;;  %v1142_v23 = vadd.f32 %v1109_v50, %v1030_v1 }
 0x33a   : > { %v904_v22 = vpop.f32.mrb[24].mxu0 }
 0x33b   : > { %v1158_v3 = vmax.f32 %v1142_v23, 0.0  ;;  %v1031_v4 = vmul.f32 %v2258_v54, %v904_v22  ;;  %v906_v5 = vpop.f32.mrb[25].mxu0 }
 0x33d   : > { %1174 = vst [vmem:[%s2267_s13 + $0x58] sm:$0xff] %v1158_v3  ;;  %v1143_v31 = vadd.f32 %v1114_v51, %v1031_v4 }
 0x33e   : > { %v909_v33 = vpop.f32.mrb[26].mxu0 }
 0x33f   : > { %v1159_v53 = vmax.f32 %v1143_v31, 0.0  ;;  %v1032_v32 = vmul.f32 %v2260_v36, %v909_v33  ;;  %v911_v52 = vpop.f32.mrb[27].mxu0 }
 0x341   : > { %1175 = vst [vmem:[%s2267_s13 + $0x60] sm:$0xff] %v1159_v53  ;;  %v1144_v6 = vadd.f32 %v1119_v55, %v1032_v32 }
 0x342   : > { %v914_v7 = vpop.f32.mrb[28].mxu0 }
 0x343   : > { %v1160_v8 = vmax.f32 %v1144_v6, 0.0  ;;  %v1033_v54 = vmul.f32 %v2262_v38, %v914_v7  ;;  %v916_v9 = vpop.f32.mrb[29].mxu0 }
 0x345   : > { %1176 = vst [vmem:[%s2267_s13 + $0x68] sm:$0xff] %v1160_v8  ;;  %v1145_v12 = vadd.f32 %v1124_v11, %v1033_v54 }
 0x346   : > { %v919_v13 = vpop.f32.mrb[30].mxu0 }
 0x347   : > { %v1161_v36 = vmax.f32 %v1145_v12, 0.0  ;;  %v1034_v14 = vmul.f32 %v2264_v41, %v919_v13  ;;  %v921_v15 = vpop.f32.mrb[31].mxu0 }
 0x349   : > { %1177 = vst [vmem:[%s2267_s13 + $0x70] sm:$0xff] %v1161_v36  ;;  %v1146_v17 = vadd.f32 %v1129_v16, %v1034_v14 }
 0x34b   : > { %v1162_v38 = vmax.f32 %v1146_v17, 0.0 }
 0x34d   : > { %1178 = vst [vmem:[%s2267_s13 + $0x78] sm:$0xff] %v1162_v38 }
 0x34e   : > { %1662 = shalt.err (!%p1659_p9)
}
 0x34f   : > { %s1663_s26 = scalar_lea.hbm %s2297_s16, 2048  ;;  %s1667_s11 = scalar_lea.hbm %s2349_s5, 4096 }
 0x350   : > { %p1664_p13 = scmp.ne.s32.totalorder %s2297_s16, %s1663_s26  ;;  %p1668_p6 = scmp.lt.u32.totalorder %s2297_s16, %s2349_s5 }
 0x351   : > { %p1669_p10 = scmp.lt.u32.totalorder %s1667_s11, %s1663_s26  ;;  %p1671_p0 = scmp.lt.u32.totalorder %s1663_s26, %s2297_s16 }
 0x352   : > { %p1665_p2 = pnand %p1664_p13, %p2362_p12 }
 0x353   : > { %p1670_p11 = por %p1669_p10, %p1668_p6 }
 0x354   : > { %p1666_p5 = pneg %p1665_p2 }
 0x355   : > { %p1672_p3 = por %p1671_p0, %p1670_p11 }
 0x357   : > { %p1673_p4 = pnand %p1672_p3, %p1666_p5 }
 0x359   : > { %1676 = shalt.err (!%p1673_p4)
}
 0x35a   : > { %s1723_s14 = smov 128   ;;  %s1724_s28 = smov 256  }
 0x35b   : > { %s1725_s15 = smov 8  }
 0x35c   : > { %1566 = dma.vmem_to_hbm [thread:$0]  (%p2362_p12), %s2299_s9, 2048, %s2297_s16, %s1180_s22, %s1723_s14, %s1724_s28, %s1725_s15  }
 0x35d PF: > { %s1207_s6 = sand.u32 1, %s1703_s18   ;;  %p2363_p7 = scmp.ne.s32.totalorder %s2355_s30, 0 }
 0x35e   : > { %s1208_s17 = scalar_lea.sflag [#allocation5], %s1207_s6 }
 0x35f   : > { %p1573_p8 = pnand %p1275_p1, %p2363_p7 }
 0x361   : > { %1698 = dma.done.wait (!%p1573_p8), %s1208_s17, 2048  }
 0x362   : > { %1700 = vsyncadd (!%p1573_p8), %s1208_s17, 4294965248  ;;  %p16_p9 = scmp.ge.s32.totalorder %s1781_s24, 4   ;;  %s2364_s18 = smov %s1707_s19 }
 0x363   : > { %s2365_s19 = smov %s1711_s20  ;;  %s2366_s20 = smov %s1793_s27 }
 0x364   : > { %s2367_s21 = smov %s1781_s24  ;;  %18 = sbr.rel (!%p16_p9) target bundleno = 4 (0x4), region = 126 }
 0x36b   :  { %1213 = vsyncpa [#allocation4], 1 }
 0x36c   :  { %1215 = vsyncpa [#allocation4 + $0x1], 1 }
 0x36d   :  { %1216 = vsyncpa [#allocation5], 1 }
 0x36e   :  { %1218 = vsyncpa [#allocation5 + $0x1], 1 }

</bundles_post_ra>
